<compile_context>
chip_gen: v7x
topology: tpu7x:2x2x1
jax: 0.10.0
libtpu: 0.0.40
codegen_flags: <defaults>
</compile_context>

<pallas_src>
import jax
import jax.numpy as jnp
from jax.experimental import pallas as pl
from jax.experimental.pallas import tpu as pltpu


def _round_up(n, m):
    return ((n + m - 1) // m) * m


def _cdiv(a, b):
    return (a + b - 1) // b


def _kernel(x_ref, w1_ref, b1_ref, w2_ref, b2_ref, w3_ref, b3_ref, o_ref):
    # Layer 1: (tile_b, nc_pad) bf16 @ (nc_pad, 1024) bf16 -> f32 acc (MXU).
    h1 = jnp.dot(x_ref[...], w1_ref[...], preferred_element_type=jnp.float32)
    # Fused epilogue: bias-add + ReLU in f32, emit h1 directly as bf16 so only
    # one copy of the largest intermediate stays live (halves layer-2 vld).
    h1 = jnp.maximum(h1 + b1_ref[...], 0.0).astype(jnp.bfloat16)

    # Layer 2: (tile_b, 1024) bf16 @ (1024, 128) bf16 -> f32 acc (MXU).
    h2 = jnp.dot(h1, w2_ref[...], preferred_element_type=jnp.float32)
    h2 = jnp.maximum(h2 + b2_ref[...], 0.0)

    # Layer 3: contract the 128-wide feature axis of w3 (dim, 128) against
    # h2 (tile_b, 128) -> (dim, tile_b): result is lane-dense, so the output
    # store is a full-lane unmasked vst instead of a (tile_b, 1) masked store.
    z = jax.lax.dot_general(
        w3_ref[...], h2,
        dimension_numbers=(((1,), (1,)), ((), ())),
        preferred_element_type=jnp.float32) + b3_ref[...]

    # Exact sigmoid; the z block is tiny so exp/div cost is negligible.
    o_ref[...] = 1.0 / (1.0 + jnp.exp(-z))


def discriminator_fl_forward(x, kernel_params, dim=1, tile_b_max=1024):
    """x: (B, nc) float32. kernel_params: padded params from pad_params().
    Returns (B, dim) float32 == sigmoid(FCs(x))."""
    w1, b1, w2, b2, w3, b3 = kernel_params
    B, nc = x.shape
    nc_pad = w1.shape[0]

    # Balanced batch tiling: >=2 (and even) grid steps so v7x's two
    # TensorCores split the work; tile_b is a multiple of 128 so both the x
    # sublane dim and the lane-dense output block are fully aligned.
    num_tiles = max(2, _cdiv(B, tile_b_max))
    num_tiles += num_tiles % 2
    tile_b = _round_up(_cdiv(B, num_tiles), 128)
    b_pad = num_tiles * tile_b

    # Single fused pad + bf16 cast of x (halves the per-step HBM input stream
    # and the double-buffered x VMEM; no extra in-kernel cast pass).
    x_p = jnp.zeros((b_pad, nc_pad), jnp.bfloat16).at[:B, :nc].set(
        x.astype(jnp.bfloat16))

    # Resident (constant index_map) weight/bias blocks: DMA'd once, stay in
    # VMEM across all grid steps.
    resident = lambda shape: pl.BlockSpec(shape, lambda i: (0,) * len(shape))

    out = pl.pallas_call(
        _kernel,
        out_shape=jax.ShapeDtypeStruct((dim, b_pad), jnp.float32),
        grid=(num_tiles,),
        in_specs=[
            pl.BlockSpec((tile_b, nc_pad), lambda i: (i, 0)),
            resident(w1.shape), resident(b1.shape),
            resident(w2.shape), resident(b2.shape),
            resident(w3.shape), resident(b3.shape),
        ],
        out_specs=pl.BlockSpec((dim, tile_b), lambda i: (0, i)),
        compiler_params=pltpu.CompilerParams(
            dimension_semantics=("parallel",)),
    )(x_p, w1, b1, w2, b2, w3, b3)

    # (dim, b_pad) -> (B, dim); tiny host-side slice/transpose.
    return out[:, :B].T


def init_params(key, nc=50, dim=1, h_ch=1000):
    """Logical (unpadded, f32) params matching weights_init:
    W ~ N(0, 0.0002), b = 0.0001.  Weights stored transposed, i.e. (in, out)."""
    k1, k2, k3 = jax.random.split(key, 3)
    std = 0.0002
    w1 = jax.random.normal(k1, (nc, h_ch), jnp.float32) * std
    b1 = jnp.full((1, h_ch), 0.0001, jnp.float32)
    w2 = jax.random.normal(k2, (h_ch, 100), jnp.float32) * std
    b2 = jnp.full((1, 100), 0.0001, jnp.float32)
    w3 = jax.random.normal(k3, (100, dim), jnp.float32) * std
    b3 = jnp.full((1, dim), 0.0001, jnp.float32)
    return (w1, b1, w2, b2, w3, b3)


def pad_params(params, nc=50, dim=1, h_ch=1000):
    """Pad to (8,128)-aligned shapes; cast layer-1/2 weights to bf16.
    All padding is zeros (including bias padding) so padded channels
    contribute exactly 0 downstream.  Layer-3 weight is stored as a
    (dim, 128) row block for the lane-dense output path; its bias is a
    (dim, 1) column that broadcasts across lanes."""
    w1, b1, w2, b2, w3, b3 = params
    nc_pad = _round_up(nc, 64)
    h1_pad = _round_up(h_ch, 128)
    h2_pad = _round_up(100, 128)

    w1_p = jnp.zeros((nc_pad, h1_pad), jnp.bfloat16).at[:nc, :h_ch].set(
        w1.astype(jnp.bfloat16))
    b1_p = jnp.zeros((1, h1_pad), jnp.float32).at[:, :h_ch].set(b1)
    w2_p = jnp.zeros((h1_pad, h2_pad), jnp.bfloat16).at[:h_ch, :100].set(
        w2.astype(jnp.bfloat16))
    b2_p = jnp.zeros((1, h2_pad), jnp.float32).at[:, :100].set(b2)
    w3_p = jnp.zeros((dim, h2_pad), jnp.float32).at[:, :100].set(w3.T)
    b3_p = b3.astype(jnp.float32).T  # (dim, 1)
    return (w1_p, b1_p, w2_p, b2_p, w3_p, b3_p)


def _reference(x, params):
    """Pure-JAX reference on the original (unpadded f32) params."""
    w1, b1, w2, b2, w3, b3 = params
    h = jnp.maximum(x @ w1 + b1, 0.0)
    h = jnp.maximum(h @ w2 + b2, 0.0)
    z = h @ w3 + b3
    return 1.0 / (1.0 + jnp.exp(-z))


if __name__ == "__main__":
    key = jax.random.PRNGKey(0)
    kx, kp = jax.random.split(key)

    B, nc, dim = 2, 50, 1
    x = jax.random.normal(kx, (B, nc), jnp.float32)
    params = init_params(kp, nc=nc, dim=dim)
    kparams = pad_params(params, nc=nc, dim=dim)

    out = discriminator_fl_forward(x, kparams, dim=dim)
    out = jax.block_until_ready(out)

    ref = _reference(x, params)
    assert out.shape == (B, dim), out.shape
    # bf16 weight/input quantization => compare with slightly loose tolerance.
    assert jnp.allclose(out, ref, atol=1e-4, rtol=1e-4), (out, ref)

    print("KERNEL_OK")
</pallas_src>

<mosaic_0001>
module attributes {stable_mosaic.version = 11 : i64} {
  func.func @_kernel(%arg0: i32, %arg1: memref<128x64xbf16, #tpu.memory_space<vmem>>, %arg2: memref<64x1024xbf16, #tpu.memory_space<vmem>>, %arg3: memref<1x1024xf32, #tpu.memory_space<vmem>>, %arg4: memref<1024x128xbf16, #tpu.memory_space<vmem>>, %arg5: memref<1x128xf32, #tpu.memory_space<vmem>>, %arg6: memref<1x128xf32, #tpu.memory_space<vmem>>, %arg7: memref<1x1xf32, #tpu.memory_space<vmem>>, %arg8: memref<1x128xf32, #tpu.memory_space<vmem>>) attributes {dimension_semantics = [#tpu.dimension_semantics<parallel>], iteration_bounds = array<i64: 2>, scalar_prefetch = 0 : i64, scratch_operands = 0 : i64, tpu.core_type = #tpu.core_type<tc>, window_params = [{transform_indices = @transform_0, window_bounds = array<i64: 128, 64>}, {pipeline_mode = #tpu.pipeline_mode<synchronous>, transform_indices = @transform_1, window_bounds = array<i64: 64, 1024>}, {pipeline_mode = #tpu.pipeline_mode<synchronous>, transform_indices = @transform_2, window_bounds = array<i64: 1, 1024>}, {pipeline_mode = #tpu.pipeline_mode<synchronous>, transform_indices = @transform_3, window_bounds = array<i64: 1024, 128>}, {pipeline_mode = #tpu.pipeline_mode<synchronous>, transform_indices = @transform_4, window_bounds = array<i64: 1, 128>}, {pipeline_mode = #tpu.pipeline_mode<synchronous>, transform_indices = @transform_5, window_bounds = array<i64: 1, 128>}, {pipeline_mode = #tpu.pipeline_mode<synchronous>, transform_indices = @transform_6, window_bounds = array<i64: 1, 1>}, {transform_indices = @transform_7, window_bounds = array<i64: 1, 128>}]} {
    %c0 = arith.constant 0 : index
    %c0_0 = arith.constant 0 : index
    %0 = vector.load %arg1[%c0, %c0_0] : memref<128x64xbf16, #tpu.memory_space<vmem>>, vector<128x64xbf16>
    %c0_1 = arith.constant 0 : index
    %c0_2 = arith.constant 0 : index
    %1 = vector.load %arg2[%c0_1, %c0_2] : memref<64x1024xbf16, #tpu.memory_space<vmem>>, vector<64x1024xbf16>
    %cst = arith.constant dense<0.000000e+00> : vector<128x1024xf32>
    %2 = tpu.matmul %0, %1, %cst {dimension_numbers = #tpu.dot_dimension_numbers<[1], [0], [0], [1], [0, 0, 1, 1], [], []>} : vector<128x64xbf16>, vector<64x1024xbf16>, vector<128x1024xf32> -> vector<128x1024xf32>
    %c0_3 = arith.constant 0 : index
    %c0_4 = arith.constant 0 : index
    %3 = vector.load %arg3[%c0_3, %c0_4] : memref<1x1024xf32, #tpu.memory_space<vmem>>, vector<1x1024xf32>
    %4 = vector.broadcast %3 : vector<1x1024xf32> to vector<128x1024xf32>
    %5 = arith.addf %2, %4 : vector<128x1024xf32>
    %cst_5 = arith.constant 0.000000e+00 : f32
    %6 = vector.broadcast %cst_5 : f32 to vector<128x1024xf32>
    %7 = arith.maximumf %5, %6 : vector<128x1024xf32>
    %8 = arith.truncf %7 : vector<128x1024xf32> to vector<128x1024xbf16>
    %c0_6 = arith.constant 0 : index
    %c0_7 = arith.constant 0 : index
    %9 = vector.load %arg4[%c0_6, %c0_7] : memref<1024x128xbf16, #tpu.memory_space<vmem>>, vector<1024x128xbf16>
    %cst_8 = arith.constant dense<0.000000e+00> : vector<128x128xf32>
    %10 = tpu.matmul %8, %9, %cst_8 {dimension_numbers = #tpu.dot_dimension_numbers<[1], [0], [0], [1], [0, 0, 1, 1], [], []>} : vector<128x1024xbf16>, vector<1024x128xbf16>, vector<128x128xf32> -> vector<128x128xf32>
    %c0_9 = arith.constant 0 : index
    %c0_10 = arith.constant 0 : index
    %11 = vector.load %arg5[%c0_9, %c0_10] : memref<1x128xf32, #tpu.memory_space<vmem>>, vector<1x128xf32>
    %12 = vector.broadcast %11 : vector<1x128xf32> to vector<128x128xf32>
    %13 = arith.addf %10, %12 : vector<128x128xf32>
    %cst_11 = arith.constant 0.000000e+00 : f32
    %14 = vector.broadcast %cst_11 : f32 to vector<128x128xf32>
    %15 = arith.maximumf %13, %14 : vector<128x128xf32>
    %c0_12 = arith.constant 0 : index
    %c0_13 = arith.constant 0 : index
    %16 = vector.load %arg6[%c0_12, %c0_13] : memref<1x128xf32, #tpu.memory_space<vmem>>, vector<1x128xf32>
    %cst_14 = arith.constant dense<0.000000e+00> : vector<1x128xf32>
    %17 = tpu.matmul %16, %15, %cst_14 {dimension_numbers = #tpu.dot_dimension_numbers<[1], [1], [0], [0], [0, 0, 1, 0], [], []>} : vector<1x128xf32>, vector<128x128xf32>, vector<1x128xf32> -> vector<1x128xf32>
    %c0_15 = arith.constant 0 : index
    %c0_16 = arith.constant 0 : index
    %18 = vector.load %arg7[%c0_15, %c0_16] : memref<1x1xf32, #tpu.memory_space<vmem>>, vector<1x1xf32>
    %19 = vector.broadcast %18 : vector<1x1xf32> to vector<1x128xf32>
    %20 = arith.addf %17, %19 : vector<1x128xf32>
    %cst_17 = arith.constant 0.000000e+00 : f32
    %21 = vector.broadcast %cst_17 : f32 to vector<1x128xf32>
    %22 = arith.subf %21, %20 : vector<1x128xf32>
    %23 = math.exp %22 : vector<1x128xf32>
    %cst_18 = arith.constant 1.000000e+00 : f32
    %24 = vector.broadcast %cst_18 : f32 to vector<1x128xf32>
    %25 = arith.addf %24, %23 : vector<1x128xf32>
    %cst_19 = arith.constant 1.000000e+00 : f32
    %26 = vector.broadcast %cst_19 : f32 to vector<1x128xf32>
    %27 = arith.divf %26, %25 : vector<1x128xf32>
    %c0_20 = arith.constant 0 : index
    %c0_21 = arith.constant 0 : index
    %28 = vector.load %arg8[%c0_20, %c0_21] : memref<1x128xf32, #tpu.memory_space<vmem>>, vector<1x128xf32>
    tpu.vector_store %arg8[%c0_20, %c0_21], %27 {strides = array<i32>} : memref<1x128xf32, #tpu.memory_space<vmem>>, vector<1x128xf32>,
    return
  }
  func.func @transform_0(%arg0: i32) -> (i32, i32) {
    %c0_i32 = arith.constant 0 : i32
    %c0_i32_0 = arith.constant 0 : i32
    return %arg0, %c0_i32 : i32, i32
  }
  func.func @transform_1(%arg0: i32) -> (i32, i32) {
    %c0_i32 = arith.constant 0 : i32
    %c0_i32_0 = arith.constant 0 : i32
    %c0_i32_1 = arith.constant 0 : i32
    return %c0_i32, %c0_i32_0 : i32, i32
  }
  func.func @transform_2(%arg0: i32) -> (i32, i32) {
    %c0_i32 = arith.constant 0 : i32
    %c0_i32_0 = arith.constant 0 : i32
    %c0_i32_1 = arith.constant 0 : i32
    return %c0_i32, %c0_i32_0 : i32, i32
  }
  func.func @transform_3(%arg0: i32) -> (i32, i32) {
    %c0_i32 = arith.constant 0 : i32
    %c0_i32_0 = arith.constant 0 : i32
    %c0_i32_1 = arith.constant 0 : i32
    return %c0_i32, %c0_i32_0 : i32, i32
  }
  func.func @transform_4(%arg0: i32) -> (i32, i32) {
    %c0_i32 = arith.constant 0 : i32
    %c0_i32_0 = arith.constant 0 : i32
    %c0_i32_1 = arith.constant 0 : i32
    return %c0_i32, %c0_i32_0 : i32, i32
  }
  func.func @transform_5(%arg0: i32) -> (i32, i32) {
    %c0_i32 = arith.constant 0 : i32
    %c0_i32_0 = arith.constant 0 : i32
    %c0_i32_1 = arith.constant 0 : i32
    return %c0_i32, %c0_i32_0 : i32, i32
  }
  func.func @transform_6(%arg0: i32) -> (i32, i32) {
    %c0_i32 = arith.constant 0 : i32
    %c0_i32_0 = arith.constant 0 : i32
    %c0_i32_1 = arith.constant 0 : i32
    return %c0_i32, %c0_i32_0 : i32, i32
  }
  func.func @transform_7(%arg0: i32) -> (i32, i32) {
    %c0_i32 = arith.constant 0 : i32
    %c0_i32_0 = arith.constant 0 : i32
    return %c0_i32, %arg0 : i32, i32
  }
}

</mosaic_0001>

<bundles_post_ra>
// kernel: tpu_custom_call.1
= control target key start
LH: loop header
LB: loop body
LE: loop exit
PB: predicated region body
PF: predicated region fallthrough
CT: control target
= control target key end

     0   :  { %s3729_s0 = inlined_call_operand.vmem [shape: bf16[256,64], index: 0, kind: input, shape index: {}]   ;;  %s3730_s1 = inlined_call_operand.hbm [shape: bf16[64,1024], index: 1, kind: input, shape index: {}]   ;;  %s3731_s2 = inlined_call_operand.vmem [shape: f32[1,1024], index: 2, kind: input, shape index: {}]   ;;  %s3732_s3 = inlined_call_operand.hbm [shape: bf16[1024,128], index: 3, kind: input, shape index: {}]   ;;  %s3733_s4 = inlined_call_operand.vmem [shape: f32[1,128], index: 4, kind: input, shape index: {}]   ;;  %s3734_s5 = inlined_call_operand.vmem [shape: f32[1,128], index: 5, kind: input, shape index: {}]   ;;  %s3735_s6 = inlined_call_operand.<no memory space> [shape: f32[1,1], index: 6, kind: input, shape index: {}]   ;;  %s3736_s7 = inlined_call_operand.hbm [shape: f32[1,256], index: 7, kind: output, shape index: {}]  }
   0x1   :  { %v12_v0 = vstv %s3735_s6 }
   0x2   :  { %13 = vst [vmem:[#allocation2] sm:$0x1] %v12_v0 }
   0x3   :  { %14 = vsyncpa [#allocation4], 0 }
   0x4   :  { %15 = vsyncpa [#allocation7], 0 }
   0x5   :  { %16 = vsyncpa [#allocation5], 0 }
   0x6   :  { %18 = vsyncpa [#allocation5 + $0x1], 0  ;;  %s3180_s26 = smov 0   ;;  %s3182_s27 = smov 0  }
   0x7   :  { %s3184_s28 = smov 0   ;;  %s3186_s29 = smov 0  }
   0x8 LB: > { %s3201_s6 = sadd.s32 4294967295, %s3124_s29   ;;  %s2371_s30 = sadd.s32 4294967294, %s3124_s29   ;;  %s3124_s29 = sphi %s3186_s29, %s3754_s29   ;;  %s3120_s28 = sphi %s3184_s28, %s3753_s28   ;;  %s3116_s27 = sphi %s3182_s27, %s3752_s27   ;;  %s3112_s26 = sphi %s3180_s26, %s3751_s26  }
   0x9   : > { %s3205_s8 = sadd.s32 1, %s3124_s29   ;;  %s183_s9 = sadd.s32 1, %s3120_s28 }
   0xa   : > { %s180_s10 = ssub.s32 %s3124_s29, %s3205_s8  ;;  %p193_p0 = scmp.ne.s32.totalorder %s3120_s28, %s3116_s27 }
   0xb   : > { %p181_p1 = scmp.eq.s32.totalorder %s180_s10, 0  ;;  %p194_p2 = scmp.eq.s32.totalorder %s3201_s6, 1 }
   0xc   : > { %p199_p3 = scmp.ne.s32.totalorder %s3116_s27, %s3112_s26  ;;  %p200_p4 = scmp.eq.s32.totalorder %s2371_s30, 1 }
   0xd   : > { %s3216_s11 = scalar_select %p181_p1, %s3120_s28, %s183_s9  }
   0xe   : > { %p3218_p5 = por %p194_p2, %p193_p0  ;;  %p3222_p6 = por %p200_p4, %p199_p3 }
   0xf   : > { %p2372_p7 = scmp.ge.s32.totalorder %s3124_s29, 1  ;;  %p207_p8 = scmp.lt.s32.totalorder %s3124_s29, 3 }
  0x10   : > { %s3740_s12 = scalar_select %p3218_p5, 1, 0 }
  0x11   : > { %s3741_s13 = scalar_select %p3222_p6, 1, 0 }
  0x12   : > { %p3737_p9 = scmp.eq.s32.totalorder %s3201_s6, 0  ;;  %p3229_p10 = pnand %p2372_p7, %p207_p8 }
  0x13   : > { %s3126_s15 = smov [#allocation3]   ;;  %s3127_s18 = smov [#allocation6]  }
  0x14   : > { %s3742_s14 = scalar_select %p3229_p10, 1, 0 }
  0x15   : > { %s219_s16 = sshll.u32 %s3126_s15, 4  ;;  %p2863_p11 = pneg %p3229_p10  ;;  %s220_s16 = int_to_ptr.vmem [resolvable:$true] %s219_s16 }
  0x16   : > { %s235_s19 = sshll.u32 %s3127_s18, 4  ;;  %s2998_s22 = scalar_lea.hbm %s3730_s1, 4096  ;;  %s3241_s19 = int_to_ptr.vmem [resolvable:$true] %s235_s19 }
  0x17   : > { %p3237_p12 = pnand %p3737_p9, %p2863_p11  ;;  %p2999_p13 = scmp.ne.s32.totalorder %s3730_s1, %s2998_s22 }
  0x18   : > { %p3005_p3 = scmp.lt.u32.totalorder %s2998_s22, %s3730_s1 }
  0x19   : > { %p3000_p0 = pneg %p3237_p12 }
  0x1b   : > { %p3001_p1 = pnand %p3000_p0, %p2999_p13 }
  0x1d   : > { %p3002_p2 = pneg %p3001_p1 }
  0x1f   : > { %p3007_p4 = pnand %p3005_p3, %p3002_p2 }
  0x21   : > { %3010 = shalt.err (!%p3007_p4)
}
  0x22   : > { %s3011_s9 = scalar_lea.vmem %s220_s16, 4096  ;;  %p3019_p9 = scmp.lt.s32.totalorder %s220_s16, %s220_s16 }
  0x23   : > { %p3012_p7 = scmp.ne.s32.totalorder %s220_s16, %s3011_s9  ;;  %p3020_p6 = scmp.lt.s32.totalorder %s3011_s9, %s3011_s9 }
  0x25   : > { %p3014_p8 = pnand %p3012_p7, %p3000_p0  ;;  %p3021_p5 = por %p3020_p6, %p3019_p9 }
  0x27   : > { %p3015_p11 = pneg %p3014_p8 }
  0x29   : > { %p3022_p10 = pnand %p3021_p5, %p3015_p11 }
  0x2b   : > { %3025 = shalt.err (!%p3022_p10)
}
  0x2c   : > { %s3128_s10 = smov 512   ;;  %s3129_s15 = smov 32  }
  0x2d   : > { %2866 = dma.hbm_to_vmem [thread:$0]  (!%p3237_p12), %s3730_s1, 4096, %s220_s16, [#allocation4], %s3128_s10, %s3128_s10, %s3129_s15  }
  0x2e   : > { %s3026_s23 = scalar_lea.hbm %s3732_s3, 8192 }
  0x2f   : > { %p3027_p13 = scmp.ne.s32.totalorder %s3732_s3, %s3026_s23  ;;  %p3033_p9 = scmp.lt.u32.totalorder %s3026_s23, %s3732_s3 }
  0x31   : > { %p3029_p5 = pnand %p3027_p13, %p3000_p0 }
  0x33   : > { %p3030_p6 = pneg %p3029_p5 }
  0x35   : > { %p3035_p10 = pnand %p3033_p9, %p3030_p6 }
  0x37   : > { %3038 = shalt.err (!%p3035_p10)
}
  0x38   : > { %s3039_s16 = scalar_lea.vmem %s3241_s19, 8192  ;;  %p3047_p4 = scmp.lt.s32.totalorder %s3241_s19, %s3241_s19 }
  0x39   : > { %p3040_p1 = scmp.ne.s32.totalorder %s3241_s19, %s3039_s16  ;;  %p3048_p7 = scmp.lt.s32.totalorder %s3039_s16, %s3039_s16 }
  0x3b   : > { %p3042_p2 = pnand %p3040_p1, %p3000_p0  ;;  %p3049_p8 = por %p3048_p7, %p3047_p4 }
  0x3d   : > { %p3043_p3 = pneg %p3042_p2 }
  0x3f   : > { %p3050_p11 = pnand %p3049_p8, %p3043_p3 }
  0x41   : > { %3053 = shalt.err (!%p3050_p11)
}
  0x42   : > { %s3130_s10 = smov 64   ;;  %s3131_s15 = smov 4  }
  0x43   : > { %2869 = dma.hbm_to_vmem [thread:$0]  (!%p3237_p12), %s3732_s3, 8192, %s3241_s19, [#allocation7], %s3130_s10, %s3130_s10, %s3131_s15  }
  0x44   : > { %p3744_p13 = scmp.ne.s32.totalorder %s3742_s14, 0 }
  0x45   : > { %p3745_p0 = scmp.eq.s32.totalorder (!%p3744_p13), %s3201_s6, 0 }
  0x46   : > { %269 = sbr.rel (%p3744_p13) target bundleno = 931 (0x3a3), region = 48 }
  0x4d   : > { %3099 = dma.done.wait (%p3745_p0), [#allocation4], 4096   ;;  %p3746_p5 = pmov %p3745_p0 }
  0x4e   : > { %p3747_p6 = pmov %p3745_p0 }
  0x4f   : > { %3101 = vsyncadd (%p3746_p5), [#allocation4], 4294963200 }
  0x50   : > { %3103 = dma.done.wait (%p3747_p6), [#allocation7], 8192   ;;  %p3748_p9 = pmov %p3745_p0 }
  0x51   : > { %s3301_s17 = sshll.u32 %s3201_s6, 4  ;;  %v3132_v1 = vmov 0   ;;  %v327_v2 = vld [vmem:[#allocation3] sm:$0xff]  ;;  %v328_v4 = vld [vmem:[#allocation3 + $0x8] sm:$0xff]  ;;  %v329_v32 = vld [vmem:[#allocation3 + $0x10] sm:$0xff]  ;;  %vm601_vm0 = vcmask 523264  }
  0x52   : > { %3105 = vsyncadd (%p3748_p9), [#allocation7], 4294959104  ;;  %658 = vmatprep.mubr.bf16.mxu0 %v3132_v1  ;;  %771 = vmatprep.mubr.bf16.mxu1 %v3132_v1  ;;  %p305_p12 = scmp.lt.s32.totalorder %s3301_s17, 31  ;;  %v331_v3 = vld [vmem:[#allocation3 + $0x20] sm:$0xff]  ;;  %v332_v6 = vld [vmem:[#allocation3 + $0x28] sm:$0xff]  ;;  %vm3134_vm1 = vmmov 0  }
  0x53   : > { %2921 = vset.pattern.permute.xlu0 %v3132_v1  ;;  %v2390_v5 = vcombine.high %v327_v2, %v331_v3  ;;  %v2389_v7 = vcombine.low %v327_v2, %v331_v3  ;;  %v335_v8 = vld [vmem:[#allocation3 + $0x40] sm:$0xff]  ;;  %v2392_v10 = vcombine.high %v328_v4, %v332_v6  ;;  %v2391_v11 = vcombine.low %v328_v4, %v332_v6  ;;  %v336_v13 = vld [vmem:[#allocation3 + $0x48] sm:$0xff]  ;;  %v333_v33 = vld [vmem:[#allocation3 + $0x30] sm:$0xff]  ;;  %s302_s10 = sand.u32 1, %s3116_s27   ;;  %p3749_p1 = scmp.ne.s32.totalorder %s3740_s12, 0 }
  0x54   : > { %s306_s14 = scalar_select %p305_p12, %s3301_s17, 31  ;;  %v339_v9 = vld [vmem:[#allocation3 + $0x60] sm:$0xff]  ;;  %v340_v14 = vld [vmem:[#allocation3 + $0x68] sm:$0xff]  ;;  %v330_v34 = vld [vmem:[#allocation3 + $0x18] sm:$0xff]  ;;  %v2394_v39 = vcombine.high %v329_v32, %v333_v33  ;;  %v2393_v43 = vcombine.low %v329_v32, %v333_v33 }
  0x55   : > { %v2398_v12 = vcombine.high %v335_v8, %v339_v9  ;;  %v343_v15 = vld [vmem:[#allocation3 + $0x80] sm:$0xff]  ;;  %626 = vmatprep.subr.bf16.mxu0 %v2390_v5  ;;  %v2400_v16 = vcombine.high %v336_v13, %v340_v14  ;;  %v344_v18 = vld [vmem:[#allocation3 + $0x88] sm:$0xff]  ;;  %739 = vmatprep.subr.bf16.mxu1 %v2392_v10  ;;  %v2397_v20 = vcombine.low %v335_v8, %v339_v9  ;;  %v334_v35 = vld [vmem:[#allocation3 + $0x38] sm:$0xff]  ;;  %s303_s15 = scalar_lea.vmem [#allocation8], %s302_s10  ;;  %s2282_s19 = scalar_lea.sflag [#allocation5], %s302_s10 }
  0x56   : > { %s2380_s6 = sshll.u32 %s306_s14, 2  ;;  %v347_v17 = vld [vmem:[#allocation3 + $0xa0] sm:$0xff]  ;;  %v348_v19 = vld [vmem:[#allocation3 + $0xa8] sm:$0xff]  ;;  %627 = vmatpush1.bf16.msra.mxu0 %v2389_v7  ;;  %740 = vmatpush1.bf16.msra.mxu1 %v2391_v11  ;;  %v2399_v21 = vcombine.low %v336_v13, %v340_v14  ;;  %v2396_v40 = vcombine.high %v330_v34, %v334_v35  ;;  %v337_v41 = vld [vmem:[#allocation3 + $0x50] sm:$0xff]  ;;  %v2395_v46 = vcombine.low %v330_v34, %v334_v35  ;;  %s2294_s18 = sshll.u32 %s303_s15, 4  ;;  %s3689_s18 = int_to_ptr.vmem [resolvable:$true] %s2294_s18 }
  0x57   : > { %s3311_s22 = scalar_lea.vmem %s3729_s0, %s2380_s6  ;;  %628 = vmatprep.subr.bf16.mxu0 %v2398_v12  ;;  %v2406_v22 = vcombine.high %v343_v15, %v347_v17  ;;  %741 = vmatprep.subr.bf16.mxu1 %v2400_v16  ;;  %v2408_v23 = vcombine.high %v344_v18, %v348_v19  ;;  %v351_v24 = vld [vmem:[#allocation3 + $0xc0] sm:$0xff]  ;;  %v352_v26 = vld [vmem:[#allocation3 + $0xc8] sm:$0xff]  ;;  %v2405_v28 = vcombine.low %v343_v15, %v347_v17  ;;  %v341_v42 = vld [vmem:[#allocation3 + $0x70] sm:$0xff]  ;;  %s3687_s6 = scalar_lea.hbm %s3736_s7, %s3301_s17 }
  0x58   : > { %v355_v25 = vld [vmem:[#allocation3 + $0xe0] sm:$0xff]  ;;  %v356_v27 = vld [vmem:[#allocation3 + $0xe8] sm:$0xff]  ;;  %v2407_v29 = vcombine.low %v344_v18, %v348_v19  ;;  %v338_v44 = vld [vmem:[#allocation3 + $0x58] sm:$0xff]  ;;  %v2402_v49 = vcombine.high %v337_v41, %v341_v42  ;;  %v2401_v53 = vcombine.low %v337_v41, %v341_v42  ;;  %s3054_s21 = scalar_lea.vmem %s3689_s18, 16 }
  0x59   : > { %v2414_v30 = vcombine.high %v351_v24, %v355_v25  ;;  %v2416_v31 = vcombine.high %v352_v26, %v356_v27  ;;  %v2413_v36 = vcombine.low %v351_v24, %v355_v25  ;;  %v2415_v37 = vcombine.low %v352_v26, %v356_v27  ;;  %v3314_v38 = vld [vmem:[%s3311_s22] sm:$0xff]   ;;  %v345_v47 = vld [vmem:[#allocation3 + $0x90] sm:$0xff]  ;;  %v3322_v54 = vld [vmem:[%s3311_s22 + $0x8] sm:$0xff]   ;;  %p3055_p10 = scmp.ne.s32.totalorder %s3689_s18, %s3054_s21 }
  0x5a   : > { %629 = vmatpush1.bf16.msra.mxu0 %v2397_v20  ;;  %742 = vmatpush1.bf16.msra.mxu1 %v2399_v21  ;;  %v342_v45 = vld [vmem:[#allocation3 + $0x78] sm:$0xff]  ;;  %v349_v48 = vld [vmem:[#allocation3 + $0xb0] sm:$0xff]  ;;  %v2930_v6 = vld [vmem:[#allocation6 + $0x40] sm:$0xff]  }
  0x5b   : > { %630 = vmatprep.subr.bf16.mxu0 %v2406_v22  ;;  %743 = vmatprep.subr.bf16.mxu1 %v2408_v23  ;;  %v346_v50 = vld [vmem:[#allocation3 + $0x98] sm:$0xff]  ;;  %v2404_v51 = vcombine.high %v338_v44, %v342_v45  ;;  %v2403_v55 = vcombine.low %v338_v44, %v342_v45  ;;  %v2410_v56 = vcombine.high %v345_v47, %v349_v48  ;;  %v353_v57 = vld [vmem:[#allocation3 + $0xd0] sm:$0xff]  ;;  %v2932_v7 = vld [vmem:[#allocation6 + $0xc0] sm:$0xff]   ;;  %v361_v45 = vlaneseq  ;;  %p3056_p2 = pnand %p3055_p10, %p3749_p1 }
  0x5c   : > { %v350_v52 = vld [vmem:[#allocation3 + $0xb8] sm:$0xff]  ;;  %v357_v59 = vld [vmem:[#allocation3 + $0xf0] sm:$0xff]  ;;  %v2409_v62 = vcombine.low %v345_v47, %v349_v48  ;;  %v3359_v10 = vld [vmem:[%s3311_s22 + $0x28] sm:$0xff]  }
  0x5d   : > { %v2412_v58 = vcombine.high %v346_v50, %v350_v52  ;;  %v354_v60 = vld [vmem:[#allocation3 + $0xd8] sm:$0xff]  ;;  %v2411_v63 = vcombine.low %v346_v50, %v350_v52  ;;  %v2418_v0 = vcombine.high %v353_v57, %v357_v59  ;;  %v3332_v3 = vld [vmem:[%s3311_s22 + $0x10] sm:$0xff]   ;;  %v2417_v4 = vcombine.low %v353_v57, %v357_v59  ;;  %v2931_v13 = vld [vmem:[#allocation6] sm:$0xff]   ;;  %p3057_p3 = pneg %p3056_p2 }
  0x5e   : > { %631 = vmatpush1.bf16.msra.mxu0 %v2405_v28  ;;  %744 = vmatpush1.bf16.msra.mxu1 %v2407_v29  ;;  %v358_v61 = vld [vmem:[#allocation3 + $0xf8] sm:$0xff]  ;;  %v3368_v11 = vld [vmem:[%s3311_s22 + $0x30] sm:$0xff]   ;;  %v2933_v14 = vld [vmem:[#allocation6 + $0x80] sm:$0xff]  }
  0x5f   : > { %632 = vmatprep.subr.bf16.mxu0 %v2414_v30  ;;  %745 = vmatprep.subr.bf16.mxu1 %v2416_v31  ;;  %v2420_v2 = vcombine.high %v354_v60, %v358_v61  ;;  %v2419_v5 = vcombine.low %v354_v60, %v358_v61  ;;  %v3341_v8 = vld [vmem:[%s3311_s22 + $0x18] sm:$0xff]   ;;  %v3350_v9 = vld [vmem:[%s3311_s22 + $0x20] sm:$0xff]   ;;  %v2934_v15 = vld [vmem:[#allocation6 + $0x48] sm:$0xff]  }
  0x60   : > { %v3377_v12 = vld [vmem:[%s3311_s22 + $0x38] sm:$0xff]   ;;  %v2936_v16 = vld [vmem:[#allocation6 + $0xc8] sm:$0xff]   ;;  %v2946_v27 = vld [vmem:[#allocation6 + $0x60] sm:$0xff]   ;;  %s3136_s22 = smov [#allocation8]  }
  0x61   : > { %v2935_v17 = vld [vmem:[#allocation6 + $0x8] sm:$0xff]   ;;  %v2938_v19 = vld [vmem:[#allocation6 + $0x50] sm:$0xff]   ;;  %v2942_v23 = vld [vmem:[#allocation6 + $0x58] sm:$0xff]   ;;  %s3058_s23 = sshll.u32 %s3136_s22, 4  ;;  %s3059_s23 = int_to_ptr.vmem [resolvable:$false] %s3058_s23 }
  0x62   : > { %633 = vmatpush1.bf16.msra.mxu0 %v2413_v36  ;;  %746 = vmatpush1.bf16.msra.mxu1 %v2415_v37  ;;  %v2937_v18 = vld [vmem:[#allocation6 + $0x88] sm:$0xff]   ;;  %v2940_v20 = vld [vmem:[#allocation6 + $0xd0] sm:$0xff]   ;;  %v2944_v24 = vld [vmem:[#allocation6 + $0xd8] sm:$0xff]   ;;  %s3060_s24 = scalar_lea.vmem %s3059_s23, 32  ;;  %p3061_p4 = scmp.lt.s32.totalorder %s3689_s18, %s3059_s23 }
  0x63   : > { %852 = vmatprep.subr.bf16.mxu0 %v2394_v39  ;;  %965 = vmatprep.subr.bf16.mxu1 %v2396_v40  ;;  %v2939_v21 = vld [vmem:[#allocation6 + $0x10] sm:$0xff]   ;;  %v2943_v25 = vld [vmem:[#allocation6 + $0x18] sm:$0xff]   ;;  %v2948_v28 = vld [vmem:[#allocation6 + $0xe0] sm:$0xff]   ;;  %p3062_p7 = scmp.lt.s32.totalorder %s3060_s24, %s3054_s21 }
  0x64   : > { %v2941_v22 = vld [vmem:[#allocation6 + $0x90] sm:$0xff]   ;;  %v2945_v26 = vld [vmem:[#allocation6 + $0x98] sm:$0xff]   ;;  %v2947_v29 = vld [vmem:[#allocation6 + $0x20] sm:$0xff]  }
  0x65   : > { %2421 = vmatmul.mubr.msk.bf16.vlgmr.msra.gmra.mrb[0].mxu0 %vm601_vm0, %v3314_v38  ;;  %2429 = vmatmul.mubr.msk.bf16.vlgmr.msra.gmra.mrb[0].mxu1 %vm601_vm0, %v3314_v38  ;;  %v2949_v30 = vld [vmem:[#allocation6 + $0xa0] sm:$0xff]   ;;  %v2950_v31 = vld [vmem:[#allocation6 + $0x68] sm:$0xff]   ;;  %v2954_v35 = vld [vmem:[#allocation6 + $0x70] sm:$0xff]   ;;  %p3063_p8 = por %p3062_p7, %p3061_p4 }
  0x66   : > { %853 = vmatpush1.bf16.msra.mxu0 %v2393_v43  ;;  %966 = vmatpush1.bf16.msra.mxu1 %v2395_v46  ;;  %v2952_v32 = vld [vmem:[#allocation6 + $0xe8] sm:$0xff]   ;;  %v2956_v36 = vld [vmem:[#allocation6 + $0xf0] sm:$0xff]   ;;  %v2958_v39 = vld [vmem:[#allocation6 + $0x78] sm:$0xff]   ;;  %v3431_v46 = vshrl.u32 %v361_v45, 7 }
  0x67   : > { %668 = vmatprep.mubr.bf16.mxu0 %v3132_v1  ;;  %781 = vmatprep.mubr.bf16.mxu1 %v3132_v1  ;;  %v2951_v33 = vld [vmem:[#allocation6 + $0x28] sm:$0xff]   ;;  %v2955_v37 = vld [vmem:[#allocation6 + $0x30] sm:$0xff]   ;;  %v2960_v40 = vld [vmem:[#allocation6 + $0xf8] sm:$0xff]   ;;  %p3064_p11 = pnand %p3063_p8, %p3057_p3 }
  0x68   : > { %854 = vmatprep.subr.bf16.mxu0 %v2402_v49  ;;  %967 = vmatprep.subr.bf16.mxu1 %v2404_v51  ;;  %v2953_v34 = vld [vmem:[#allocation6 + $0xa8] sm:$0xff]   ;;  %v2959_v41 = vld [vmem:[#allocation6 + $0x38] sm:$0xff]   ;;  %v2962_v43 = vld [vmem:[#allocation6 + $0x140] sm:$0xff]   ;;  %v363_v47 = vsub.s32 0, %v3431_v46  ;;  %v371_v49 = vsub.s32 2, %v3431_v46  ;;  %v375_v50 = vsub.s32 3, %v3431_v46 }
  0x69   : > { %v2961_v42 = vld [vmem:[#allocation6 + $0xb8] sm:$0xff]   ;;  %v2964_v44 = vld [vmem:[#allocation6 + $0x1c0] sm:$0xff]   ;;  %v2969_v45 = vld [vmem:[#allocation6 + $0x188] sm:$0xff]  }
  0x6a   : > { %855 = vmatpush1.bf16.msra.mxu0 %v2401_v53  ;;  %968 = vmatpush1.bf16.msra.mxu1 %v2403_v55  ;;  %v3437_v48 = vld [vmem:[%s3731_s2] sm:$0xff] }
  0x6b   : > { %856 = vmatprep.subr.bf16.mxu0 %v2410_v56  ;;  %969 = vmatprep.subr.bf16.mxu1 %v2412_v58  ;;  %v3445_v51 = vrot.slane %v3437_v48, %v363_v47  ;;  %v3448_v52 = vrot.slane %v3437_v48, %v371_v49  ;;  %v2970_v49 = vld [vmem:[#allocation6 + $0x150] sm:$0xff]  }
  0x6d   : > { %2422 = vmatmul.mubr.msk.bf16.gmra.mrb[4].mxu0 %vm601_vm0, %v3322_v54  ;;  %2430 = vmatmul.mubr.msk.bf16.gmra.mrb[4].mxu1 %vm601_vm0, %v3322_v54 }
  0x6e   : > { %678 = vmatprep.mubr.bf16.mxu0 %v3132_v1  ;;  %791 = vmatprep.mubr.bf16.mxu1 %v3132_v1 }
  0x6f   : > { %857 = vmatpush1.bf16.msra.mxu0 %v2409_v62  ;;  %970 = vmatpush1.bf16.msra.mxu1 %v2411_v63 }
  0x70   : > { %858 = vmatprep.subr.bf16.mxu0 %v2418_v0  ;;  %971 = vmatprep.subr.bf16.mxu1 %v2420_v2 }
  0x73   : > { %859 = vmatpush1.bf16.msra.mxu0 %v2417_v4  ;;  %972 = vmatpush1.bf16.msra.mxu1 %v2419_v5 }
  0x74   : > { %2521 = vmatprep.subr.bf16.mxu0 %v2930_v6  ;;  %2585 = vmatprep.subr.bf16.mxu1 %v2932_v7 }
  0x75   : > { %2423 = vmatmul.mubr.msk.bf16.gmra.mrb[8].mxu0 %vm601_vm0, %v3332_v3  ;;  %2431 = vmatmul.mubr.msk.bf16.gmra.mrb[8].mxu1 %vm601_vm0, %v3332_v3 }
  0x76   : > { %688 = vmatprep.mubr.bf16.mxu0 %v3132_v1  ;;  %801 = vmatprep.mubr.bf16.mxu1 %v3132_v1 }
  0x7d   : > { %2424 = vmatmul.mubr.msk.bf16.gmra.mrb[12].mxu0 %vm601_vm0, %v3341_v8  ;;  %2432 = vmatmul.mubr.msk.bf16.gmra.mrb[12].mxu1 %vm601_vm0, %v3341_v8 }
  0x7e   : > { %698 = vmatprep.mubr.bf16.mxu0 %v3132_v1  ;;  %811 = vmatprep.mubr.bf16.mxu1 %v3132_v1 }
  0x85   : > { %2425 = vmatmul.mubr.msk.bf16.gmra.mrb[16].mxu0 %vm601_vm0, %v3350_v9  ;;  %2433 = vmatmul.mubr.msk.bf16.gmra.mrb[16].mxu1 %vm601_vm0, %v3350_v9 }
  0x86   : > { %708 = vmatprep.mubr.bf16.mxu0 %v3132_v1  ;;  %821 = vmatprep.mubr.bf16.mxu1 %v3132_v1 }
  0x8d   : > { %2426 = vmatmul.mubr.msk.bf16.gmra.mrb[20].mxu0 %vm601_vm0, %v3359_v10  ;;  %2434 = vmatmul.mubr.msk.bf16.gmra.mrb[20].mxu1 %vm601_vm0, %v3359_v10 }
  0x8e   : > { %718 = vmatprep.mubr.bf16.mxu0 %v3132_v1  ;;  %831 = vmatprep.mubr.bf16.mxu1 %v3132_v1 }
  0x95   : > { %2427 = vmatmul.mubr.msk.bf16.gmra.mrb[24].mxu0 %vm601_vm0, %v3368_v11  ;;  %2435 = vmatmul.mubr.msk.bf16.gmra.mrb[24].mxu1 %vm601_vm0, %v3368_v11 }
  0x96   : > { %728 = vmatprep.mubr.bf16.mxu0 %v3132_v1  ;;  %841 = vmatprep.mubr.bf16.mxu1 %v3132_v1 }
  0x9d   : > { %2428 = vmatmul.mubr.msk.bf16.gmra.mrb[28].mxu0 %vm601_vm0, %v3377_v12  ;;  %2436 = vmatmul.mubr.msk.bf16.gmra.mrb[28].mxu1 %vm601_vm0, %v3377_v12 }
  0x9e   : > { %884 = vmatprep.mubr.bf16.mxu0 %v3132_v1  ;;  %997 = vmatprep.mubr.bf16.mxu1 %v3132_v1 }
  0xa5   : > { %2437 = vmatmul.mubr.msk.bf16.vlgmr.msra.gmra.mrb[32].mxu0 %vm601_vm0, %v3314_v38  ;;  %2445 = vmatmul.mubr.msk.bf16.vlgmr.msra.gmra.mrb[32].mxu1 %vm601_vm0, %v3314_v38  ;;  %v2957_v38 = vld [vmem:[#allocation6 + $0xb0] sm:$0xff]  }
  0xa6   : > { %894 = vmatprep.mubr.bf16.mxu0 %v3132_v1  ;;  %1007 = vmatprep.mubr.bf16.mxu1 %v3132_v1 }
  0xa7   : > { %2522 = vmatpush3.bf16.msra.mxu0 %v2931_v13  ;;  %2586 = vmatpush3.bf16.msra.mxu1 %v2933_v14 }
  0xa8   : > { %2523 = vmatprep.subr.bf16.mxu0 %v2934_v15  ;;  %2587 = vmatprep.subr.bf16.mxu1 %v2936_v16 }
  0xab   : > { %2524 = vmatpush3.bf16.msra.mxu0 %v2935_v17  ;;  %2588 = vmatpush3.bf16.msra.mxu1 %v2937_v18 }
  0xac   : > { %2525 = vmatprep.subr.bf16.mxu0 %v2938_v19  ;;  %2589 = vmatprep.subr.bf16.mxu1 %v2940_v20  ;;  %v2963_v20 = vld [vmem:[#allocation6 + $0x100] sm:$0xff]  }
  0xad   : > { %2438 = vmatmul.mubr.msk.bf16.gmra.mrb[36].mxu0 %vm601_vm0, %v3322_v54  ;;  %2446 = vmatmul.mubr.msk.bf16.gmra.mrb[36].mxu1 %vm601_vm0, %v3322_v54  ;;  %v3454_v54 = vrot.slane %v3437_v48, %v375_v50 }
  0xae   : > { %904 = vmatprep.mubr.bf16.mxu0 %v3132_v1  ;;  %1017 = vmatprep.mubr.bf16.mxu1 %v3132_v1 }
  0xaf   : > { %2526 = vmatpush3.bf16.msra.mxu0 %v2939_v21  ;;  %2590 = vmatpush3.bf16.msra.mxu1 %v2941_v22 }
  0xb0   : > { %2527 = vmatprep.subr.bf16.mxu0 %v2942_v23  ;;  %2591 = vmatprep.subr.bf16.mxu1 %v2944_v24 }
  0xb3   : > { %2528 = vmatpush3.bf16.msra.mxu0 %v2943_v25  ;;  %2592 = vmatpush3.bf16.msra.mxu1 %v2945_v26  ;;  %v2965_v25 = vld [vmem:[#allocation6 + $0x180] sm:$0xff]   ;;  %v2966_v26 = vld [vmem:[#allocation6 + $0x148] sm:$0xff]  }
  0xb4   : > { %2529 = vmatprep.subr.bf16.mxu0 %v2946_v27  ;;  %2593 = vmatprep.subr.bf16.mxu1 %v2948_v28 }
  0xb5   : > { %2439 = vmatmul.mubr.msk.bf16.gmra.mrb[40].mxu0 %vm601_vm0, %v3332_v3  ;;  %2447 = vmatmul.mubr.msk.bf16.gmra.mrb[40].mxu1 %vm601_vm0, %v3332_v3 }
  0xb6   : > { %914 = vmatprep.mubr.bf16.mxu0 %v3132_v1  ;;  %1027 = vmatprep.mubr.bf16.mxu1 %v3132_v1 }
  0xb7   : > { %2530 = vmatpush3.bf16.msra.mxu0 %v2947_v29  ;;  %2594 = vmatpush3.bf16.msra.mxu1 %v2949_v30 }
  0xb8   : > { %2531 = vmatprep.subr.bf16.mxu0 %v2950_v31  ;;  %2595 = vmatprep.subr.bf16.mxu1 %v2952_v32  ;;  %v2968_v31 = vld [vmem:[#allocation6 + $0x1c8] sm:$0xff]  }
  0xbb   : > { %2532 = vmatpush3.bf16.msra.mxu0 %v2951_v33  ;;  %2596 = vmatpush3.bf16.msra.mxu1 %v2953_v34 }
  0xbc   : > { %2533 = vmatprep.subr.bf16.mxu0 %v2954_v35  ;;  %2597 = vmatprep.subr.bf16.mxu1 %v2956_v36 }
  0xbd   : > { %2440 = vmatmul.mubr.msk.bf16.gmra.mrb[44].mxu0 %vm601_vm0, %v3341_v8  ;;  %2448 = vmatmul.mubr.msk.bf16.gmra.mrb[44].mxu1 %vm601_vm0, %v3341_v8 }
  0xbe   : > { %924 = vmatprep.mubr.bf16.mxu0 %v3132_v1  ;;  %1037 = vmatprep.mubr.bf16.mxu1 %v3132_v1 }
  0xbf   : > { %2534 = vmatpush3.bf16.msra.mxu0 %v2955_v37  ;;  %2598 = vmatpush3.bf16.msra.mxu1 %v2957_v38 }
  0xc0   : > { %2535 = vmatprep.subr.bf16.mxu0 %v2958_v39  ;;  %2599 = vmatprep.subr.bf16.mxu1 %v2960_v40  ;;  %v2967_v40 = vld [vmem:[#allocation6 + $0x108] sm:$0xff]  }
  0xc3   : > { %2536 = vmatpush3.bf16.msra.mxu0 %v2959_v41  ;;  %2600 = vmatpush3.bf16.msra.mxu1 %v2961_v42 }
  0xc4   : > { %2649 = vmatprep.subr.bf16.mxu0 %v2962_v43  ;;  %2713 = vmatprep.subr.bf16.mxu1 %v2964_v44 }
  0xc5   : > { %2441 = vmatmul.mubr.msk.bf16.gmra.mrb[48].mxu0 %vm601_vm0, %v3350_v9  ;;  %2449 = vmatmul.mubr.msk.bf16.gmra.mrb[48].mxu1 %vm601_vm0, %v3350_v9 }
  0xc6   : > { %934 = vmatprep.mubr.bf16.mxu0 %v3132_v1  ;;  %1047 = vmatprep.mubr.bf16.mxu1 %v3132_v1 }
  0xcd   : > { %2442 = vmatmul.mubr.msk.bf16.gmra.mrb[52].mxu0 %vm601_vm0, %v3359_v10  ;;  %2450 = vmatmul.mubr.msk.bf16.gmra.mrb[52].mxu1 %vm601_vm0, %v3359_v10 }
  0xce   : > { %944 = vmatprep.mubr.bf16.mxu0 %v3132_v1  ;;  %1057 = vmatprep.mubr.bf16.mxu1 %v3132_v1 }
  0xd5   : > { %2443 = vmatmul.mubr.msk.bf16.gmra.mrb[56].mxu0 %vm601_vm0, %v3368_v11  ;;  %2451 = vmatmul.mubr.msk.bf16.gmra.mrb[56].mxu1 %vm601_vm0, %v3368_v11 }
  0xd6   : > { %954 = vmatprep.mubr.bf16.mxu0 %v3132_v1  ;;  %1067 = vmatprep.mubr.bf16.mxu1 %v3132_v1  ;;  %v367_v1 = vsub.s32 1, %v3431_v46 }
  0xd8   : > { %v3451_v53 = vrot.slane %v3437_v48, %v367_v1 }
  0xdd   : > { %2444 = vmatmul.mubr.msk.bf16.gmra.mrb[60].mxu0 %vm601_vm0, %v3377_v12  ;;  %2452 = vmatmul.mubr.msk.bf16.gmra.mrb[60].mxu1 %vm601_vm0, %v3377_v12 }
 0x138   : > { %v660_v55 = vpop.f32.mrb[0].mxu0  ;;  %v773_v57 = vpop.f32.mrb[0].mxu1 }
 0x139   : > { %v661_v56 = vadd.f32 %v660_v55, %v3445_v51  ;;  %v662_v58 = vpop.f32.mrb[1].mxu0  ;;  %v774_v59 = vadd.f32 %v773_v57, %v3448_v52  ;;  %v775_v61 = vpop.f32.mrb[1].mxu1 }
 0x13a   : > { %v663_v60 = vadd.f32 %v662_v58, %v3451_v53  ;;  %v664_v62 = vpop.f32.mrb[2].mxu0  ;;  %v776_v63 = vadd.f32 %v775_v61, %v3454_v54  ;;  %v777_v2 = vpop.f32.mrb[2].mxu1 }
 0x13b   : > { %v665_v0 = vadd.f32 %v664_v62, %v3445_v51  ;;  %v666_v3 = vpop.f32.mrb[3].mxu0  ;;  %v1080_v4 = vmax.f32 %v774_v59, 0.0  ;;  %v778_v5 = vadd.f32 %v777_v2, %v3448_v52  ;;  %v779_v7 = vpop.f32.mrb[3].mxu1  ;;  %v1078_v8 = vmax.f32 %v661_v56, 0.0  ;;  %v2972_v56 = vld [vmem:[#allocation6 + $0x1d0] sm:$0xff]  }
 0x13c   : > { %v667_v6 = vadd.f32 %v666_v3, %v3451_v53  ;;  %v1081_v9 = vmax.f32 %v776_v63, 0.0  ;;  %v780_v11 = vadd.f32 %v779_v7, %v3454_v54  ;;  %v1079_v12 = vmax.f32 %v663_v60, 0.0  ;;  %v2971_v62 = vld [vmem:[#allocation6 + $0x110] sm:$0xff]  }
 0x13d   : > { %v1086_v10 = vmax.f32 %v665_v0, 0.0  ;;  %v1088_v13 = vmax.f32 %v778_v5, 0.0  ;;  %v2974_v5 = vld [vmem:[#allocation6 + $0x158] sm:$0xff]  }
 0x13e   : > { %v1087_v14 = vmax.f32 %v667_v6, 0.0  ;;  %v1089_v16 = vmax.f32 %v780_v11, 0.0 }
 0x13f   : > { %v1206_v15 = vpack.c.bf16 %v1086_v10, %v1078_v8  ;;  %v1208_v17 = vpack.c.bf16 %v1088_v13, %v1080_v4  ;;  %v2973_v4 = vld [vmem:[#allocation6 + $0x190] sm:$0xff]   ;;  %v2976_v10 = vld [vmem:[#allocation6 + $0x1d8] sm:$0xff]  }
 0x140   : > { %v1207_v18 = vpack.c.bf16 %v1087_v14, %v1079_v12  ;;  %v670_v19 = vpop.f32.mrb[4].mxu0  ;;  %v1209_v21 = vpack.c.bf16 %v1089_v16, %v1081_v9  ;;  %v783_v23 = vpop.f32.mrb[4].mxu1 }
 0x141   : > { %v671_v22 = vadd.f32 %v670_v19, %v3445_v51  ;;  %v672_v24 = vpop.f32.mrb[5].mxu0  ;;  %v784_v27 = vadd.f32 %v783_v23, %v3448_v52  ;;  %v785_v29 = vpop.f32.mrb[5].mxu1  ;;  %v2975_v19 = vld [vmem:[#allocation6 + $0x118] sm:$0xff]  }
 0x142   : > { %v673_v28 = vadd.f32 %v672_v24, %v3451_v53  ;;  %v674_v30 = vpop.f32.mrb[6].mxu0  ;;  %1821 = vmatprep.mubr.bf16.mxu0 %v1207_v18  ;;  %v786_v32 = vadd.f32 %v785_v29, %v3454_v54  ;;  %v787_v34 = vpop.f32.mrb[6].mxu1  ;;  %1918 = vmatprep.mubr.bf16.mxu1 %v1209_v21  ;;  %v2977_v24 = vld [vmem:[#allocation6 + $0x198] sm:$0xff]   ;;  %v2980_v29 = vld [vmem:[#allocation6 + $0x1e0] sm:$0xff]  }
 0x143   : > { %v675_v33 = vadd.f32 %v674_v30, %v3445_v51  ;;  %v676_v35 = vpop.f32.mrb[7].mxu0  ;;  %1822 = vmatmul.mubr.bf16.vlgmr.msra.gmra.mrb[64].mxu0 %v1206_v15  ;;  %v1096_v36 = vmax.f32 %v784_v27, 0.0  ;;  %v788_v37 = vadd.f32 %v787_v34, %v3448_v52  ;;  %v789_v39 = vpop.f32.mrb[7].mxu1  ;;  %1919 = vmatmul.mubr.bf16.vlgmr.msra.gmra.mrb[64].mxu1 %v1208_v17  ;;  %v1094_v41 = vmax.f32 %v671_v22, 0.0 }
 0x144   : > { %v677_v38 = vadd.f32 %v676_v35, %v3451_v53  ;;  %2650 = vmatpush3.bf16.msra.mxu0 %v2963_v20  ;;  %v1097_v42 = vmax.f32 %v786_v32, 0.0  ;;  %v790_v44 = vadd.f32 %v789_v39, %v3454_v54  ;;  %2714 = vmatpush3.bf16.msra.mxu1 %v2965_v25  ;;  %v1095_v1 = vmax.f32 %v673_v28, 0.0  ;;  %v2978_v25 = vld [vmem:[#allocation6 + $0x160] sm:$0xff]  }
 0x145   : > { %v1102_v43 = vmax.f32 %v675_v33, 0.0  ;;  %2651 = vmatprep.subr.bf16.mxu0 %v2966_v26  ;;  %v1104_v50 = vmax.f32 %v788_v37, 0.0  ;;  %2715 = vmatprep.subr.bf16.mxu1 %v2968_v31  ;;  %v2979_v35 = vld [vmem:[#allocation6 + $0x120] sm:$0xff]  }
 0x146   : > { %v1103_v55 = vmax.f32 %v677_v38, 0.0  ;;  %v1105_v58 = vmax.f32 %v790_v44, 0.0 }
 0x147   : > { %v1214_v57 = vpack.c.bf16 %v1102_v43, %v1094_v41  ;;  %v1216_v59 = vpack.c.bf16 %v1104_v50, %v1096_v36  ;;  %v2982_v41 = vld [vmem:[#allocation6 + $0x168] sm:$0xff]  }
 0x148   : > { %v1215_v60 = vpack.c.bf16 %v1103_v55, %v1095_v1  ;;  %v680_v61 = vpop.f32.mrb[8].mxu0  ;;  %2652 = vmatpush3.bf16.msra.mxu0 %v2967_v40  ;;  %v1217_v63 = vpack.c.bf16 %v1105_v58, %v1097_v42  ;;  %v793_v2 = vpop.f32.mrb[8].mxu1  ;;  %2716 = vmatpush3.bf16.msra.mxu1 %v2969_v45  ;;  %v2981_v40 = vld [vmem:[#allocation6 + $0x1a0] sm:$0xff]  }
 0x149   : > { %v681_v0 = vadd.f32 %v680_v61, %v3445_v51  ;;  %v682_v3 = vpop.f32.mrb[9].mxu0  ;;  %2653 = vmatprep.subr.bf16.mxu0 %v2970_v49  ;;  %v794_v6 = vadd.f32 %v793_v2, %v3448_v52  ;;  %v795_v8 = vpop.f32.mrb[9].mxu1  ;;  %2717 = vmatprep.subr.bf16.mxu1 %v2972_v56  ;;  %v2984_v49 = vld [vmem:[#allocation6 + $0x1e8] sm:$0xff]  }
 0x14a   : > { %v683_v7 = vadd.f32 %v682_v3, %v3451_v53  ;;  %v684_v9 = vpop.f32.mrb[10].mxu0  ;;  %1829 = vmatprep.mubr.bf16.mxu0 %v1215_v60  ;;  %v796_v11 = vadd.f32 %v795_v8, %v3454_v54  ;;  %v797_v13 = vpop.f32.mrb[10].mxu1  ;;  %1926 = vmatprep.mubr.bf16.mxu1 %v1217_v63  ;;  %v2983_v61 = vld [vmem:[#allocation6 + $0x128] sm:$0xff]   ;;  %v2988_v8 = vld [vmem:[#allocation6 + $0x1f0] sm:$0xff]  }
 0x14b   : > { %v685_v12 = vadd.f32 %v684_v9, %v3445_v51  ;;  %v686_v14 = vpop.f32.mrb[11].mxu0  ;;  %1830 = vmatmul.mubr.bf16.gmra.mrb[68].mxu0 %v1214_v57  ;;  %v1112_v15 = vmax.f32 %v794_v6, 0.0  ;;  %v798_v16 = vadd.f32 %v797_v13, %v3448_v52  ;;  %v799_v18 = vpop.f32.mrb[11].mxu1  ;;  %1927 = vmatmul.mubr.bf16.gmra.mrb[68].mxu1 %v1216_v59  ;;  %v1110_v20 = vmax.f32 %v681_v0, 0.0  ;;  %v2985_v3 = vld [vmem:[#allocation6 + $0x1a8] sm:$0xff]  }
 0x14c   : > { %v687_v17 = vadd.f32 %v686_v14, %v3451_v53  ;;  %2654 = vmatpush3.bf16.msra.mxu0 %v2971_v62  ;;  %v1113_v21 = vmax.f32 %v796_v11, 0.0  ;;  %v800_v23 = vadd.f32 %v799_v18, %v3454_v54  ;;  %2718 = vmatpush3.bf16.msra.mxu1 %v2973_v4  ;;  %v1111_v26 = vmax.f32 %v683_v7, 0.0  ;;  %v2986_v4 = vld [vmem:[#allocation6 + $0x170] sm:$0xff]  }
 0x14d   : > { %v1118_v22 = vmax.f32 %v685_v12, 0.0  ;;  %2655 = vmatprep.subr.bf16.mxu0 %v2974_v5  ;;  %v1120_v27 = vmax.f32 %v798_v16, 0.0  ;;  %2719 = vmatprep.subr.bf16.mxu1 %v2976_v10  ;;  %v2987_v14 = vld [vmem:[#allocation6 + $0x130] sm:$0xff]  }
 0x14e   : > { %v1119_v28 = vmax.f32 %v687_v17, 0.0  ;;  %v1121_v31 = vmax.f32 %v800_v23, 0.0 }
 0x14f   : > { %v1222_v30 = vpack.c.bf16 %v1118_v22, %v1110_v20  ;;  %v1224_v32 = vpack.c.bf16 %v1120_v27, %v1112_v15  ;;  %v2990_v20 = vld [vmem:[#allocation6 + $0x178] sm:$0xff]  }
 0x150   : > { %v1223_v33 = vpack.c.bf16 %v1119_v28, %v1111_v26  ;;  %v690_v34 = vpop.f32.mrb[12].mxu0  ;;  %2656 = vmatpush3.bf16.msra.mxu0 %v2975_v19  ;;  %v1225_v36 = vpack.c.bf16 %v1121_v31, %v1113_v21  ;;  %v803_v38 = vpop.f32.mrb[12].mxu1  ;;  %2720 = vmatpush3.bf16.msra.mxu1 %v2977_v24  ;;  %v2989_v19 = vld [vmem:[#allocation6 + $0x1b0] sm:$0xff]  }
 0x151   : > { %v691_v37 = vadd.f32 %v690_v34, %v3445_v51  ;;  %v692_v39 = vpop.f32.mrb[13].mxu0  ;;  %2657 = vmatprep.subr.bf16.mxu0 %v2978_v25  ;;  %v804_v42 = vadd.f32 %v803_v38, %v3448_v52  ;;  %v805_v44 = vpop.f32.mrb[13].mxu1  ;;  %2721 = vmatprep.subr.bf16.mxu1 %v2980_v29  ;;  %v2992_v25 = vld [vmem:[#allocation6 + $0x1f8] sm:$0xff]  }
 0x152   : > { %v693_v43 = vadd.f32 %v692_v39, %v3451_v53  ;;  %v694_v45 = vpop.f32.mrb[14].mxu0  ;;  %1837 = vmatprep.mubr.bf16.mxu0 %v1223_v33  ;;  %v806_v1 = vadd.f32 %v805_v44, %v3454_v54  ;;  %v807_v55 = vpop.f32.mrb[14].mxu1  ;;  %1934 = vmatprep.mubr.bf16.mxu1 %v1225_v36  ;;  %v2991_v34 = vld [vmem:[#allocation6 + $0x138] sm:$0xff]  }
 0x153   : > { %v695_v50 = vadd.f32 %v694_v45, %v3445_v51  ;;  %v696_v56 = vpop.f32.mrb[15].mxu0  ;;  %1838 = vmatmul.mubr.bf16.gmra.mrb[72].mxu0 %v1222_v30  ;;  %v1128_v57 = vmax.f32 %v804_v42, 0.0  ;;  %v808_v58 = vadd.f32 %v807_v55, %v3448_v52  ;;  %v809_v60 = vpop.f32.mrb[15].mxu1  ;;  %1935 = vmatmul.mubr.bf16.gmra.mrb[72].mxu1 %v1224_v32  ;;  %v1126_v62 = vmax.f32 %v691_v37, 0.0  ;;  %v2993_v39 = vld [vmem:[#allocation6 + $0x1b8] sm:$0xff]  }
 0x154   : > { %v697_v59 = vadd.f32 %v696_v56, %v3451_v53  ;;  %2658 = vmatpush3.bf16.msra.mxu0 %v2979_v35  ;;  %v1129_v63 = vmax.f32 %v806_v1, 0.0  ;;  %v810_v2 = vadd.f32 %v809_v60, %v3454_v54  ;;  %2722 = vmatpush3.bf16.msra.mxu1 %v2981_v40  ;;  %v1127_v5 = vmax.f32 %v693_v43, 0.0 }
 0x155   : > { %v1134_v0 = vmax.f32 %v695_v50, 0.0  ;;  %2659 = vmatprep.subr.bf16.mxu0 %v2982_v41  ;;  %v1136_v6 = vmax.f32 %v808_v58, 0.0  ;;  %2723 = vmatprep.subr.bf16.mxu1 %v2984_v49 }
 0x156   : > { %v1135_v7 = vmax.f32 %v697_v59, 0.0  ;;  %v1137_v10 = vmax.f32 %v810_v2, 0.0 }
 0x157   : > { %v1230_v9 = vpack.c.bf16 %v1134_v0, %v1126_v62  ;;  %v1232_v11 = vpack.c.bf16 %v1136_v6, %v1128_v57 }
 0x158   : > { %v1231_v12 = vpack.c.bf16 %v1135_v7, %v1127_v5  ;;  %v700_v13 = vpop.f32.mrb[16].mxu0  ;;  %2660 = vmatpush3.bf16.msra.mxu0 %v2983_v61  ;;  %v1233_v15 = vpack.c.bf16 %v1137_v10, %v1129_v63  ;;  %v813_v17 = vpop.f32.mrb[16].mxu1  ;;  %2724 = vmatpush3.bf16.msra.mxu1 %v2985_v3 }
 0x159   : > { %v701_v16 = vadd.f32 %v700_v13, %v3445_v51  ;;  %v702_v18 = vpop.f32.mrb[17].mxu0  ;;  %2661 = vmatprep.subr.bf16.mxu0 %v2986_v4  ;;  %v814_v21 = vadd.f32 %v813_v17, %v3448_v52  ;;  %v815_v23 = vpop.f32.mrb[17].mxu1  ;;  %2725 = vmatprep.subr.bf16.mxu1 %v2988_v8 }
 0x15a   : > { %v703_v22 = vadd.f32 %v702_v18, %v3451_v53  ;;  %v704_v24 = vpop.f32.mrb[18].mxu0  ;;  %1845 = vmatprep.mubr.bf16.mxu0 %v1231_v12  ;;  %v816_v26 = vadd.f32 %v815_v23, %v3454_v54  ;;  %v817_v28 = vpop.f32.mrb[18].mxu1  ;;  %1942 = vmatprep.mubr.bf16.mxu1 %v1233_v15 }
 0x15b   : > { %v705_v27 = vadd.f32 %v704_v24, %v3445_v51  ;;  %v706_v29 = vpop.f32.mrb[19].mxu0  ;;  %1846 = vmatmul.mubr.bf16.gmra.mrb[76].mxu0 %v1230_v9  ;;  %v1144_v30 = vmax.f32 %v814_v21, 0.0  ;;  %v818_v31 = vadd.f32 %v817_v28, %v3448_v52  ;;  %v819_v33 = vpop.f32.mrb[19].mxu1  ;;  %1943 = vmatmul.mubr.bf16.gmra.mrb[76].mxu1 %v1232_v11  ;;  %v1142_v35 = vmax.f32 %v701_v16, 0.0 }
 0x15c   : > { %v707_v32 = vadd.f32 %v706_v29, %v3451_v53  ;;  %2662 = vmatpush3.bf16.msra.mxu0 %v2987_v14  ;;  %v1145_v36 = vmax.f32 %v816_v26, 0.0  ;;  %v820_v38 = vadd.f32 %v819_v33, %v3454_v54  ;;  %2726 = vmatpush3.bf16.msra.mxu1 %v2989_v19  ;;  %v1143_v40 = vmax.f32 %v703_v22, 0.0 }
 0x15d   : > { %v1150_v37 = vmax.f32 %v705_v27, 0.0  ;;  %2663 = vmatprep.subr.bf16.mxu0 %v2990_v20  ;;  %v1152_v41 = vmax.f32 %v818_v31, 0.0  ;;  %2727 = vmatprep.subr.bf16.mxu1 %v2992_v25 }
 0x15e   : > { %v1151_v42 = vmax.f32 %v707_v32, 0.0  ;;  %v1153_v44 = vmax.f32 %v820_v38, 0.0 }
 0x15f   : > { %v1238_v43 = vpack.c.bf16 %v1150_v37, %v1142_v35  ;;  %v1240_v45 = vpack.c.bf16 %v1152_v41, %v1144_v30 }
 0x160   : > { %v1239_v49 = vpack.c.bf16 %v1151_v42, %v1143_v40  ;;  %v710_v1 = vpop.f32.mrb[20].mxu0  ;;  %2664 = vmatpush3.bf16.msra.mxu0 %v2991_v34  ;;  %v1241_v50 = vpack.c.bf16 %v1153_v44, %v1145_v36  ;;  %v823_v56 = vpop.f32.mrb[20].mxu1  ;;  %2728 = vmatpush3.bf16.msra.mxu1 %v2993_v39  ;;  %v379_v44 = vsub.s32 4, %v3431_v46 }
 0x161   : > { %v711_v55 = vadd.f32 %v710_v1, %v3445_v51  ;;  %v712_v57 = vpop.f32.mrb[21].mxu0  ;;  %v824_v58 = vadd.f32 %v823_v56, %v3448_v52  ;;  %v825_v60 = vpop.f32.mrb[21].mxu1 }
 0x162   : > { %v713_v59 = vadd.f32 %v712_v57, %v3451_v53  ;;  %v714_v61 = vpop.f32.mrb[22].mxu0  ;;  %1853 = vmatprep.mubr.bf16.mxu0 %v1239_v49  ;;  %v826_v62 = vadd.f32 %v825_v60, %v3454_v54  ;;  %v827_v0 = vpop.f32.mrb[22].mxu1  ;;  %1950 = vmatprep.mubr.bf16.mxu1 %v1241_v50  ;;  %v383_v50 = vsub.s32 5, %v3431_v46 }
 0x163   : > { %v715_v63 = vadd.f32 %v714_v61, %v3445_v51  ;;  %v716_v2 = vpop.f32.mrb[23].mxu0  ;;  %1854 = vmatmul.mubr.bf16.gmra.mrb[80].mxu0 %v1238_v43  ;;  %v1160_v3 = vmax.f32 %v824_v58, 0.0  ;;  %v828_v4 = vadd.f32 %v827_v0, %v3448_v52  ;;  %v829_v6 = vpop.f32.mrb[23].mxu1  ;;  %1951 = vmatmul.mubr.bf16.gmra.mrb[80].mxu1 %v1240_v45  ;;  %v1158_v7 = vmax.f32 %v711_v55, 0.0 }
 0x164   : > { %v717_v5 = vadd.f32 %v716_v2, %v3451_v53  ;;  %v1161_v8 = vmax.f32 %v826_v62, 0.0  ;;  %v830_v10 = vadd.f32 %v829_v6, %v3454_v54  ;;  %v1159_v11 = vmax.f32 %v713_v59, 0.0 }
 0x165   : > { %v1166_v9 = vmax.f32 %v715_v63, 0.0  ;;  %v1168_v12 = vmax.f32 %v828_v4, 0.0  ;;  %v387_v63 = vsub.s32 6, %v3431_v46  ;;  %v391_v6 = vsub.s32 7, %v3431_v46 }
 0x166   : > { %v1167_v13 = vmax.f32 %v717_v5, 0.0  ;;  %v1169_v15 = vmax.f32 %v830_v10, 0.0  ;;  %v3521_v5 = vrot.slane %v3437_v48, %v379_v44 }
 0x167   : > { %v1246_v14 = vpack.c.bf16 %v1166_v9, %v1158_v7  ;;  %v1248_v16 = vpack.c.bf16 %v1168_v12, %v1160_v3 }
 0x168   : > { %v1247_v17 = vpack.c.bf16 %v1167_v13, %v1159_v11  ;;  %v720_v18 = vpop.f32.mrb[24].mxu0  ;;  %v1249_v19 = vpack.c.bf16 %v1169_v15, %v1161_v8  ;;  %v833_v21 = vpop.f32.mrb[24].mxu1  ;;  %v3527_v11 = vrot.slane %v3437_v48, %v383_v50 }
 0x169   : > { %v721_v20 = vadd.f32 %v720_v18, %v3445_v51  ;;  %v722_v22 = vpop.f32.mrb[25].mxu0  ;;  %v834_v23 = vadd.f32 %v833_v21, %v3448_v52  ;;  %v835_v25 = vpop.f32.mrb[25].mxu1  ;;  %v3531_v18 = vrot.slane %v3437_v48, %v387_v63 }
 0x16a   : > { %v723_v24 = vadd.f32 %v722_v22, %v3451_v53  ;;  %v724_v26 = vpop.f32.mrb[26].mxu0  ;;  %1861 = vmatprep.mubr.bf16.mxu0 %v1247_v17  ;;  %v836_v27 = vadd.f32 %v835_v25, %v3454_v54  ;;  %v837_v29 = vpop.f32.mrb[26].mxu1  ;;  %1958 = vmatprep.mubr.bf16.mxu1 %v1249_v19 }
 0x16b   : > { %v725_v28 = vadd.f32 %v724_v26, %v3445_v51  ;;  %v726_v30 = vpop.f32.mrb[27].mxu0  ;;  %1862 = vmatmul.mubr.bf16.gmra.mrb[84].mxu0 %v1246_v14  ;;  %v1176_v31 = vmax.f32 %v834_v23, 0.0  ;;  %v838_v32 = vadd.f32 %v837_v29, %v3448_v52  ;;  %v839_v34 = vpop.f32.mrb[27].mxu1  ;;  %1959 = vmatmul.mubr.bf16.gmra.mrb[84].mxu1 %v1248_v16  ;;  %v1174_v35 = vmax.f32 %v721_v20, 0.0 }
 0x16c   : > { %v727_v33 = vadd.f32 %v726_v30, %v3451_v53  ;;  %v1177_v36 = vmax.f32 %v836_v27, 0.0  ;;  %v840_v38 = vadd.f32 %v839_v34, %v3454_v54  ;;  %v1175_v39 = vmax.f32 %v723_v24, 0.0 }
 0x16d   : > { %v1182_v37 = vmax.f32 %v725_v28, 0.0  ;;  %v1184_v40 = vmax.f32 %v838_v32, 0.0 }
 0x16e   : > { %v1183_v41 = vmax.f32 %v727_v33, 0.0  ;;  %v1185_v43 = vmax.f32 %v840_v38, 0.0 }
 0x16f   : > { %v1254_v42 = vpack.c.bf16 %v1182_v37, %v1174_v35  ;;  %v1256_v45 = vpack.c.bf16 %v1184_v40, %v1176_v31 }
 0x170   : > { %v1255_v49 = vpack.c.bf16 %v1183_v41, %v1175_v39  ;;  %v730_v1 = vpop.f32.mrb[28].mxu0  ;;  %v1257_v55 = vpack.c.bf16 %v1185_v43, %v1177_v36  ;;  %v843_v57 = vpop.f32.mrb[28].mxu1 }
 0x171   : > { %v731_v56 = vadd.f32 %v730_v1, %v3445_v51  ;;  %v732_v58 = vpop.f32.mrb[29].mxu0  ;;  %v844_v59 = vadd.f32 %v843_v57, %v3448_v52  ;;  %v845_v61 = vpop.f32.mrb[29].mxu1 }
 0x172   : > { %v733_v60 = vadd.f32 %v732_v58, %v3451_v53  ;;  %v734_v62 = vpop.f32.mrb[30].mxu0  ;;  %1869 = vmatprep.mubr.bf16.mxu0 %v1255_v49  ;;  %v846_v0 = vadd.f32 %v845_v61, %v3454_v54  ;;  %v847_v3 = vpop.f32.mrb[30].mxu1  ;;  %1966 = vmatprep.mubr.bf16.mxu1 %v1257_v55 }
 0x173   : > { %v735_v2 = vadd.f32 %v734_v62, %v3445_v51  ;;  %v736_v4 = vpop.f32.mrb[31].mxu0  ;;  %1870 = vmatmul.mubr.bf16.gmra.mrb[88].mxu0 %v1254_v42  ;;  %v1192_v7 = vmax.f32 %v844_v59, 0.0  ;;  %v848_v8 = vadd.f32 %v847_v3, %v3448_v52  ;;  %v849_v10 = vpop.f32.mrb[31].mxu1  ;;  %1967 = vmatmul.mubr.bf16.gmra.mrb[88].mxu1 %v1256_v45  ;;  %v1190_v51 = vmax.f32 %v731_v56, 0.0 }
 0x174   : > { %v737_v9 = vadd.f32 %v736_v4, %v3451_v53  ;;  %v1193_v12 = vmax.f32 %v846_v0, 0.0  ;;  %v850_v14 = vadd.f32 %v849_v10, %v3454_v54  ;;  %v1191_v15 = vmax.f32 %v733_v60, 0.0 }
 0x175   : > { %v1198_v13 = vmax.f32 %v735_v2, 0.0  ;;  %v1200_v16 = vmax.f32 %v848_v8, 0.0  ;;  %v3534_v53 = vrot.slane %v3437_v48, %v391_v6 }
 0x176   : > { %v1199_v17 = vmax.f32 %v737_v9, 0.0  ;;  %v1201_v52 = vmax.f32 %v850_v14, 0.0 }
 0x177   : > { %v1262_v19 = vpack.c.bf16 %v1198_v13, %v1190_v51  ;;  %v1264_v20 = vpack.c.bf16 %v1200_v16, %v1192_v7 }
 0x178   : > { %v1263_v21 = vpack.c.bf16 %v1199_v17, %v1191_v15  ;;  %v886_v22 = vpop.f32.mrb[32].mxu0  ;;  %v1265_v23 = vpack.c.bf16 %v1201_v52, %v1193_v12  ;;  %v999_v25 = vpop.f32.mrb[32].mxu1 }
 0x179   : > { %v887_v24 = vadd.f32 %v886_v22, %v3521_v5  ;;  %v888_v26 = vpop.f32.mrb[33].mxu0  ;;  %v1000_v54 = vadd.f32 %v999_v25, %v3531_v18  ;;  %v1001_v28 = vpop.f32.mrb[33].mxu1 }
 0x17a   : > { %v889_v27 = vadd.f32 %v888_v26, %v3527_v11  ;;  %v890_v29 = vpop.f32.mrb[34].mxu0  ;;  %1877 = vmatprep.mubr.bf16.mxu0 %v1263_v21  ;;  %v1002_v30 = vadd.f32 %v1001_v28, %v3534_v53  ;;  %v1003_v31 = vpop.f32.mrb[34].mxu1  ;;  %1974 = vmatprep.mubr.bf16.mxu1 %v1265_v23 }
 0x17b   : > { %v891_v48 = vadd.f32 %v890_v29, %v3521_v5  ;;  %v892_v32 = vpop.f32.mrb[35].mxu0  ;;  %1878 = vmatmul.mubr.bf16.gmra.mrb[92].mxu0 %v1262_v19  ;;  %v1084_v33 = vmax.f32 %v1000_v54, 0.0  ;;  %v1004_v34 = vadd.f32 %v1003_v31, %v3531_v18  ;;  %v1005_v36 = vpop.f32.mrb[35].mxu1  ;;  %1975 = vmatmul.mubr.bf16.gmra.mrb[92].mxu1 %v1264_v20  ;;  %v1082_v37 = vmax.f32 %v887_v24, 0.0 }
 0x17c   : > { %v893_v35 = vadd.f32 %v892_v32, %v3527_v11  ;;  %v1085_v38 = vmax.f32 %v1002_v30, 0.0  ;;  %v1006_v40 = vadd.f32 %v1005_v36, %v3534_v53  ;;  %v1083_v41 = vmax.f32 %v889_v27, 0.0 }
 0x17d   : > { %v1090_v39 = vmax.f32 %v891_v48, 0.0  ;;  %v1092_v42 = vmax.f32 %v1004_v34, 0.0 }
 0x17e   : > { %v1091_v43 = vmax.f32 %v893_v35, 0.0  ;;  %v1093_v45 = vmax.f32 %v1006_v40, 0.0 }
 0x17f   : > { %v1210_v44 = vpack.c.bf16 %v1090_v39, %v1082_v37  ;;  %v1212_v49 = vpack.c.bf16 %v1092_v42, %v1084_v33 }
 0x180   : > { %v1211_v1 = vpack.c.bf16 %v1091_v43, %v1083_v41  ;;  %v896_v50 = vpop.f32.mrb[36].mxu0  ;;  %v1213_v55 = vpack.c.bf16 %v1093_v45, %v1085_v38  ;;  %v1009_v57 = vpop.f32.mrb[36].mxu1 }
 0x181   : > { %v897_v56 = vadd.f32 %v896_v50, %v3521_v5  ;;  %v898_v58 = vpop.f32.mrb[37].mxu0  ;;  %v1010_v59 = vadd.f32 %v1009_v57, %v3531_v18  ;;  %v1011_v61 = vpop.f32.mrb[37].mxu1 }
 0x182   : > { %v899_v60 = vadd.f32 %v898_v58, %v3527_v11  ;;  %v900_v62 = vpop.f32.mrb[38].mxu0  ;;  %2015 = vmatprep.mubr.bf16.mxu0 %v1211_v1  ;;  %v1012_v63 = vadd.f32 %v1011_v61, %v3534_v53  ;;  %v1013_v2 = vpop.f32.mrb[38].mxu1  ;;  %2112 = vmatprep.mubr.bf16.mxu1 %v1213_v55 }
 0x183   : > { %v901_v0 = vadd.f32 %v900_v62, %v3521_v5  ;;  %v902_v3 = vpop.f32.mrb[39].mxu0  ;;  %2016 = vmatmul.mubr.bf16.vlgmr.msra.gmra.mrb[96].mxu0 %v1210_v44  ;;  %v1100_v4 = vmax.f32 %v1010_v59, 0.0  ;;  %v1014_v6 = vadd.f32 %v1013_v2, %v3531_v18  ;;  %v1015_v8 = vpop.f32.mrb[39].mxu1  ;;  %2113 = vmatmul.mubr.bf16.vlgmr.msra.gmra.mrb[96].mxu1 %v1212_v49  ;;  %v1098_v9 = vmax.f32 %v897_v56, 0.0 }
 0x184   : > { %v903_v7 = vadd.f32 %v902_v3, %v3527_v11  ;;  %v1101_v10 = vmax.f32 %v1012_v63, 0.0  ;;  %v1016_v12 = vadd.f32 %v1015_v8, %v3534_v53  ;;  %v1099_v13 = vmax.f32 %v899_v60, 0.0 }
 0x185   : > { %v1106_v51 = vmax.f32 %v901_v0, 0.0  ;;  %v1108_v14 = vmax.f32 %v1014_v6, 0.0 }
 0x186   : > { %v1107_v15 = vmax.f32 %v903_v7, 0.0  ;;  %v1109_v17 = vmax.f32 %v1016_v12, 0.0 }
 0x187   : > { %v1218_v16 = vpack.c.bf16 %v1106_v51, %v1098_v9  ;;  %v1220_v19 = vpack.c.bf16 %v1108_v14, %v1100_v4 }
 0x188   : > { %v1219_v52 = vpack.c.bf16 %v1107_v15, %v1099_v13  ;;  %v906_v20 = vpop.f32.mrb[40].mxu0  ;;  %v1221_v21 = vpack.c.bf16 %v1109_v17, %v1101_v10  ;;  %v1019_v23 = vpop.f32.mrb[40].mxu1 }
 0x189   : > { %v907_v22 = vadd.f32 %v906_v20, %v3521_v5  ;;  %v908_v24 = vpop.f32.mrb[41].mxu0  ;;  %v1020_v25 = vadd.f32 %v1019_v23, %v3531_v18  ;;  %v1021_v54 = vpop.f32.mrb[41].mxu1 }
 0x18a   : > { %v909_v26 = vadd.f32 %v908_v24, %v3527_v11  ;;  %v910_v27 = vpop.f32.mrb[42].mxu0  ;;  %2023 = vmatprep.mubr.bf16.mxu0 %v1219_v52  ;;  %v1022_v28 = vadd.f32 %v1021_v54, %v3534_v53  ;;  %v1023_v30 = vpop.f32.mrb[42].mxu1  ;;  %2120 = vmatprep.mubr.bf16.mxu1 %v1221_v21 }
 0x18b   : > { %v911_v29 = vadd.f32 %v910_v27, %v3521_v5  ;;  %v912_v48 = vpop.f32.mrb[43].mxu0  ;;  %2024 = vmatmul.mubr.bf16.gmra.mrb[100].mxu0 %v1218_v16  ;;  %v1116_v31 = vmax.f32 %v1020_v25, 0.0  ;;  %v1024_v32 = vadd.f32 %v1023_v30, %v3531_v18  ;;  %v1025_v34 = vpop.f32.mrb[43].mxu1  ;;  %2121 = vmatmul.mubr.bf16.gmra.mrb[100].mxu1 %v1220_v19  ;;  %v1114_v35 = vmax.f32 %v907_v22, 0.0 }
 0x18c   : > { %v913_v33 = vadd.f32 %v912_v48, %v3527_v11  ;;  %v1117_v36 = vmax.f32 %v1022_v28, 0.0  ;;  %v1026_v38 = vadd.f32 %v1025_v34, %v3534_v53  ;;  %v1115_v39 = vmax.f32 %v909_v26, 0.0 }
 0x18d   : > { %v1122_v37 = vmax.f32 %v911_v29, 0.0  ;;  %v1124_v40 = vmax.f32 %v1024_v32, 0.0 }
 0x18e   : > { %v1123_v41 = vmax.f32 %v913_v33, 0.0  ;;  %v1125_v43 = vmax.f32 %v1026_v38, 0.0 }
 0x18f   : > { %v1226_v42 = vpack.c.bf16 %v1122_v37, %v1114_v35  ;;  %v1228_v44 = vpack.c.bf16 %v1124_v40, %v1116_v31 }
 0x190   : > { %v1227_v45 = vpack.c.bf16 %v1123_v41, %v1115_v39  ;;  %v916_v49 = vpop.f32.mrb[44].mxu0  ;;  %v1229_v1 = vpack.c.bf16 %v1125_v43, %v1117_v36  ;;  %v1029_v55 = vpop.f32.mrb[44].mxu1 }
 0x191   : > { %v917_v50 = vadd.f32 %v916_v49, %v3521_v5  ;;  %v918_v56 = vpop.f32.mrb[45].mxu0  ;;  %v1030_v57 = vadd.f32 %v1029_v55, %v3531_v18  ;;  %v1031_v59 = vpop.f32.mrb[45].mxu1 }
 0x192   : > { %v919_v58 = vadd.f32 %v918_v56, %v3527_v11  ;;  %v920_v60 = vpop.f32.mrb[46].mxu0  ;;  %2031 = vmatprep.mubr.bf16.mxu0 %v1227_v45  ;;  %v1032_v61 = vadd.f32 %v1031_v59, %v3534_v53  ;;  %v1033_v63 = vpop.f32.mrb[46].mxu1  ;;  %2128 = vmatprep.mubr.bf16.mxu1 %v1229_v1 }
 0x193   : > { %v921_v62 = vadd.f32 %v920_v60, %v3521_v5  ;;  %v922_v0 = vpop.f32.mrb[47].mxu0  ;;  %2032 = vmatmul.mubr.bf16.gmra.mrb[104].mxu0 %v1226_v42  ;;  %v1132_v2 = vmax.f32 %v1030_v57, 0.0  ;;  %v1034_v3 = vadd.f32 %v1033_v63, %v3531_v18  ;;  %v1035_v6 = vpop.f32.mrb[47].mxu1  ;;  %2129 = vmatmul.mubr.bf16.gmra.mrb[104].mxu1 %v1228_v44  ;;  %v1130_v7 = vmax.f32 %v917_v50, 0.0 }
 0x194   : > { %v923_v4 = vadd.f32 %v922_v0, %v3527_v11  ;;  %v1133_v8 = vmax.f32 %v1032_v61, 0.0  ;;  %v1036_v10 = vadd.f32 %v1035_v6, %v3534_v53  ;;  %v1131_v51 = vmax.f32 %v919_v58, 0.0 }
 0x195   : > { %v1138_v9 = vmax.f32 %v921_v62, 0.0  ;;  %v1140_v12 = vmax.f32 %v1034_v3, 0.0 }
 0x196   : > { %v1139_v13 = vmax.f32 %v923_v4, 0.0  ;;  %v1141_v15 = vmax.f32 %v1036_v10, 0.0 }
 0x197   : > { %v1234_v14 = vpack.c.bf16 %v1138_v9, %v1130_v7  ;;  %v1236_v16 = vpack.c.bf16 %v1140_v12, %v1132_v2 }
 0x198   : > { %v1235_v17 = vpack.c.bf16 %v1139_v13, %v1131_v51  ;;  %v926_v19 = vpop.f32.mrb[48].mxu0  ;;  %v1237_v52 = vpack.c.bf16 %v1141_v15, %v1133_v8  ;;  %v1039_v21 = vpop.f32.mrb[48].mxu1 }
 0x199   : > { %v927_v20 = vadd.f32 %v926_v19, %v3521_v5  ;;  %v928_v22 = vpop.f32.mrb[49].mxu0  ;;  %v1040_v23 = vadd.f32 %v1039_v21, %v3531_v18  ;;  %v1041_v25 = vpop.f32.mrb[49].mxu1 }
 0x19a   : > { %v929_v24 = vadd.f32 %v928_v22, %v3527_v11  ;;  %v930_v26 = vpop.f32.mrb[50].mxu0  ;;  %2039 = vmatprep.mubr.bf16.mxu0 %v1235_v17  ;;  %v1042_v54 = vadd.f32 %v1041_v25, %v3534_v53  ;;  %v1043_v28 = vpop.f32.mrb[50].mxu1  ;;  %2136 = vmatprep.mubr.bf16.mxu1 %v1237_v52 }
 0x19b   : > { %v931_v27 = vadd.f32 %v930_v26, %v3521_v5  ;;  %v932_v29 = vpop.f32.mrb[51].mxu0  ;;  %2040 = vmatmul.mubr.bf16.gmra.mrb[108].mxu0 %v1234_v14  ;;  %v1148_v30 = vmax.f32 %v1040_v23, 0.0  ;;  %v1044_v48 = vadd.f32 %v1043_v28, %v3531_v18  ;;  %v1045_v32 = vpop.f32.mrb[51].mxu1  ;;  %2137 = vmatmul.mubr.bf16.gmra.mrb[108].mxu1 %v1236_v16  ;;  %v1146_v33 = vmax.f32 %v927_v20, 0.0 }
 0x19c   : > { %v933_v31 = vadd.f32 %v932_v29, %v3527_v11  ;;  %v1149_v34 = vmax.f32 %v1042_v54, 0.0  ;;  %v1046_v36 = vadd.f32 %v1045_v32, %v3534_v53  ;;  %v1147_v37 = vmax.f32 %v929_v24, 0.0 }
 0x19d   : > { %v1154_v35 = vmax.f32 %v931_v27, 0.0  ;;  %v1156_v38 = vmax.f32 %v1044_v48, 0.0 }
 0x19e   : > { %v1155_v39 = vmax.f32 %v933_v31, 0.0  ;;  %v1157_v41 = vmax.f32 %v1046_v36, 0.0 }
 0x19f   : > { %v1242_v40 = vpack.c.bf16 %v1154_v35, %v1146_v33  ;;  %v1244_v42 = vpack.c.bf16 %v1156_v38, %v1148_v30 }
 0x1a0   : > { %v1243_v43 = vpack.c.bf16 %v1155_v39, %v1147_v37  ;;  %v936_v44 = vpop.f32.mrb[52].mxu0  ;;  %v1245_v45 = vpack.c.bf16 %v1157_v41, %v1149_v34  ;;  %v1049_v1 = vpop.f32.mrb[52].mxu1 }
 0x1a1   : > { %v937_v49 = vadd.f32 %v936_v44, %v3521_v5  ;;  %v938_v50 = vpop.f32.mrb[53].mxu0  ;;  %v1050_v55 = vadd.f32 %v1049_v1, %v3531_v18  ;;  %v1051_v57 = vpop.f32.mrb[53].mxu1 }
 0x1a2   : > { %v939_v56 = vadd.f32 %v938_v50, %v3527_v11  ;;  %v940_v58 = vpop.f32.mrb[54].mxu0  ;;  %2047 = vmatprep.mubr.bf16.mxu0 %v1243_v43  ;;  %v1052_v59 = vadd.f32 %v1051_v57, %v3534_v53  ;;  %v1053_v61 = vpop.f32.mrb[54].mxu1  ;;  %2144 = vmatprep.mubr.bf16.mxu1 %v1245_v45 }
 0x1a3   : > { %v941_v60 = vadd.f32 %v940_v58, %v3521_v5  ;;  %v942_v62 = vpop.f32.mrb[55].mxu0  ;;  %2048 = vmatmul.mubr.bf16.gmra.mrb[112].mxu0 %v1242_v40  ;;  %v1164_v63 = vmax.f32 %v1050_v55, 0.0  ;;  %v1054_v0 = vadd.f32 %v1053_v61, %v3531_v18  ;;  %v1055_v3 = vpop.f32.mrb[55].mxu1  ;;  %2145 = vmatmul.mubr.bf16.gmra.mrb[112].mxu1 %v1244_v42  ;;  %v1162_v4 = vmax.f32 %v937_v49, 0.0 }
 0x1a4   : > { %v943_v2 = vadd.f32 %v942_v62, %v3527_v11  ;;  %v1165_v6 = vmax.f32 %v1052_v59, 0.0  ;;  %v1056_v8 = vadd.f32 %v1055_v3, %v3534_v53  ;;  %v1163_v9 = vmax.f32 %v939_v56, 0.0 }
 0x1a5   : > { %v1170_v7 = vmax.f32 %v941_v60, 0.0  ;;  %v1172_v10 = vmax.f32 %v1054_v0, 0.0 }
 0x1a6   : > { %v1171_v51 = vmax.f32 %v943_v2, 0.0  ;;  %v1173_v13 = vmax.f32 %v1056_v8, 0.0 }
 0x1a7   : > { %v1250_v12 = vpack.c.bf16 %v1170_v7, %v1162_v4  ;;  %v1252_v14 = vpack.c.bf16 %v1172_v10, %v1164_v63 }
 0x1a8   : > { %v1251_v15 = vpack.c.bf16 %v1171_v51, %v1163_v9  ;;  %v946_v16 = vpop.f32.mrb[56].mxu0  ;;  %v1253_v17 = vpack.c.bf16 %v1173_v13, %v1165_v6  ;;  %v1059_v52 = vpop.f32.mrb[56].mxu1 }
 0x1a9   : > { %v947_v19 = vadd.f32 %v946_v16, %v3521_v5  ;;  %v948_v20 = vpop.f32.mrb[57].mxu0  ;;  %v1060_v21 = vadd.f32 %v1059_v52, %v3531_v18  ;;  %v1061_v23 = vpop.f32.mrb[57].mxu1 }
 0x1aa   : > { %v949_v22 = vadd.f32 %v948_v20, %v3527_v11  ;;  %v950_v24 = vpop.f32.mrb[58].mxu0  ;;  %2055 = vmatprep.mubr.bf16.mxu0 %v1251_v15  ;;  %v1062_v25 = vadd.f32 %v1061_v23, %v3534_v53  ;;  %v1063_v54 = vpop.f32.mrb[58].mxu1  ;;  %2152 = vmatprep.mubr.bf16.mxu1 %v1253_v17 }
 0x1ab   : > { %v951_v26 = vadd.f32 %v950_v24, %v3521_v5  ;;  %v952_v27 = vpop.f32.mrb[59].mxu0  ;;  %2056 = vmatmul.mubr.bf16.gmra.mrb[116].mxu0 %v1250_v12  ;;  %v1180_v28 = vmax.f32 %v1060_v21, 0.0  ;;  %v1064_v29 = vadd.f32 %v1063_v54, %v3531_v18  ;;  %v1065_v48 = vpop.f32.mrb[59].mxu1  ;;  %2153 = vmatmul.mubr.bf16.gmra.mrb[116].mxu1 %v1252_v14  ;;  %v1178_v31 = vmax.f32 %v947_v19, 0.0 }
 0x1ac   : > { %v953_v30 = vadd.f32 %v952_v27, %v3527_v11  ;;  %v1181_v32 = vmax.f32 %v1062_v25, 0.0  ;;  %v1066_v34 = vadd.f32 %v1065_v48, %v3534_v53  ;;  %v1179_v35 = vmax.f32 %v949_v22, 0.0 }
 0x1ad   : > { %v1186_v33 = vmax.f32 %v951_v26, 0.0  ;;  %v1188_v36 = vmax.f32 %v1064_v29, 0.0  ;;  %v3135_v27 = vmov 0.0  }
 0x1ae   : > { %v1187_v37 = vmax.f32 %v953_v30, 0.0  ;;  %v1189_v39 = vmax.f32 %v1066_v34, 0.0 }
 0x1af   : > { %v1258_v38 = vpack.c.bf16 %v1186_v33, %v1178_v31  ;;  %v1260_v40 = vpack.c.bf16 %v1188_v36, %v1180_v28 }
 0x1b0   : > { %v1259_v41 = vpack.c.bf16 %v1187_v37, %v1179_v35  ;;  %v956_v42 = vpop.f32.mrb[60].mxu0  ;;  %v1261_v43 = vpack.c.bf16 %v1189_v39, %v1181_v32  ;;  %v1069_v45 = vpop.f32.mrb[60].mxu1 }
 0x1b1   : > { %v957_v44 = vadd.f32 %v956_v42, %v3521_v5  ;;  %v958_v49 = vpop.f32.mrb[61].mxu0  ;;  %v1070_v1 = vadd.f32 %v1069_v45, %v3531_v18  ;;  %v1071_v55 = vpop.f32.mrb[61].mxu1 }
 0x1b2   : > { %v959_v50 = vadd.f32 %v958_v49, %v3527_v11  ;;  %v960_v56 = vpop.f32.mrb[62].mxu0  ;;  %2063 = vmatprep.mubr.bf16.mxu0 %v1259_v41  ;;  %v1072_v57 = vadd.f32 %v1071_v55, %v3534_v53  ;;  %v1073_v59 = vpop.f32.mrb[62].mxu1  ;;  %2160 = vmatprep.mubr.bf16.mxu1 %v1261_v43  ;;  %v2194_v41 = vld [vmem:[#allocation2] sm:$0x1] }
 0x1b3   : > { %v961_v58 = vadd.f32 %v960_v56, %v3521_v5  ;;  %v962_v60 = vpop.f32.mrb[63].mxu0  ;;  %2064 = vmatmul.mubr.bf16.gmra.mrb[120].mxu0 %v1258_v38  ;;  %v1196_v61 = vmax.f32 %v1070_v1, 0.0  ;;  %v1074_v62 = vadd.f32 %v1073_v59, %v3531_v18  ;;  %v1075_v0 = vpop.f32.mrb[63].mxu1  ;;  %2161 = vmatmul.mubr.bf16.gmra.mrb[120].mxu1 %v1260_v40  ;;  %v1194_v2 = vmax.f32 %v957_v44, 0.0 }
 0x1b4   : > { %v963_v63 = vadd.f32 %v962_v60, %v3527_v11  ;;  %v1197_v3 = vmax.f32 %v1072_v57, 0.0  ;;  %v1076_v6 = vadd.f32 %v1075_v0, %v3534_v53  ;;  %v1195_v7 = vmax.f32 %v959_v50, 0.0  ;;  %v3604_v53 = vld [vmem:[%s3733_s4] ss:$0 sm:$0xff]  ;;  %2197 = vperm.xlu0 %2921, %v2194_v41  }
 0x1b5   : > { %v1202_v4 = vmax.f32 %v961_v58, 0.0  ;;  %v1204_v8 = vmax.f32 %v1074_v62, 0.0  ;;  %v3133_v11 = vmov 0.0|0.0  }
 0x1b6   : > { %v1203_v9 = vmax.f32 %v963_v63, 0.0  ;;  %v1205_v10 = vmax.f32 %v1076_v6, 0.0  ;;  %2829 = vmatprep.subr.bf16.mxu0 %v3133_v11 }
 0x1b7   : > { %v1266_v5 = vpack.c.bf16 %v1202_v4, %v1194_v2  ;;  %v1268_v51 = vpack.c.bf16 %v1204_v8, %v1196_v61 }
 0x1b8   : > { %v1267_v12 = vpack.c.bf16 %v1203_v9, %v1195_v7  ;;  %v1269_v13 = vpack.c.bf16 %v1205_v10, %v1197_v3 }
 0x1ba   : > { %2071 = vmatprep.mubr.bf16.mxu0 %v1267_v12  ;;  %2168 = vmatprep.mubr.bf16.mxu1 %v1269_v13 }
 0x1bb   : > { %2072 = vmatmul.mubr.bf16.gmra.mrb[124].mxu0 %v1266_v5  ;;  %2169 = vmatmul.mubr.bf16.gmra.mrb[124].mxu1 %v1268_v51 }
 0x1bc   : > { %2826 = vmatprep.mubr.msk.f32.mxu0 %vm3134_vm1, %v3135_v27 }
 0x216   : > { %v2537_v18 = vpop.f32.mrb[64].mxu0  ;;  %v2601_v14 = vpop.f32.mrb[64].mxu1 }
 0x217   : > { %v2538_v15 = vpop.f32.mrb[65].mxu0  ;;  %v2602_v17 = vpop.f32.mrb[65].mxu1 }
 0x218   : > { %v2539_v16 = vadd.f32 %v2538_v15, %v2537_v18  ;;  %v2540_v19 = vpop.f32.mrb[66].mxu0  ;;  %v2603_v52 = vadd.f32 %v2602_v17, %v2601_v14  ;;  %v2604_v20 = vpop.f32.mrb[66].mxu1 }
 0x219   : > { %v2541_v21 = vpop.f32.mrb[67].mxu0  ;;  %v2605_v24 = vpop.f32.mrb[67].mxu1 }
 0x21a   : > { %v1824_v22 = vadd.f32 %v2539_v16, %v3604_v53  ;;  %v2542_v23 = vadd.f32 %v2541_v21, %v2540_v19  ;;  %v2606_v25 = vadd.f32 %v2605_v24, %v2604_v20 }
 0x21c   : > { %v3607_v26 = vadd.f32 %v2603_v52, %v1824_v22  ;;  %v1827_v54 = vadd.f32 %v2542_v23, %v3604_v53 }
 0x21e   : > { %v3610_v28 = vadd.f32 %v2606_v25, %v1827_v54  ;;  %v2543_v29 = vpop.f32.mrb[68].mxu0  ;;  %v2607_v30 = vpop.f32.mrb[68].mxu1 }
 0x21f   : > { %v2544_v48 = vpop.f32.mrb[69].mxu0  ;;  %v2608_v32 = vpop.f32.mrb[69].mxu1 }
 0x220   : > { %v2545_v31 = vadd.f32 %v2544_v48, %v2543_v29  ;;  %v2546_v33 = vpop.f32.mrb[70].mxu0  ;;  %v2609_v34 = vadd.f32 %v2608_v32, %v2607_v30  ;;  %v2610_v35 = vpop.f32.mrb[70].mxu1 }
 0x221   : > { %v2547_v36 = vpop.f32.mrb[71].mxu0  ;;  %v2611_v39 = vpop.f32.mrb[71].mxu1 }
 0x222   : > { %v1832_v37 = vadd.f32 %v2545_v31, %v3604_v53  ;;  %v2548_v38 = vadd.f32 %v2547_v36, %v2546_v33  ;;  %v2612_v40 = vadd.f32 %v2611_v39, %v2610_v35 }
 0x224   : > { %v3613_v42 = vadd.f32 %v2609_v34, %v1832_v37  ;;  %v1835_v43 = vadd.f32 %v2548_v38, %v3604_v53 }
 0x226   : > { %v3616_v44 = vadd.f32 %v2612_v40, %v1835_v43  ;;  %v2549_v45 = vpop.f32.mrb[72].mxu0  ;;  %v2613_v49 = vpop.f32.mrb[72].mxu1 }
 0x227   : > { %v2550_v1 = vpop.f32.mrb[73].mxu0  ;;  %v2614_v55 = vpop.f32.mrb[73].mxu1 }
 0x228   : > { %v2551_v50 = vadd.f32 %v2550_v1, %v2549_v45  ;;  %v2552_v56 = vpop.f32.mrb[74].mxu0  ;;  %v2615_v57 = vadd.f32 %v2614_v55, %v2613_v49  ;;  %v2616_v58 = vpop.f32.mrb[74].mxu1 }
 0x229   : > { %v2553_v59 = vpop.f32.mrb[75].mxu0  ;;  %v2617_v62 = vpop.f32.mrb[75].mxu1 }
 0x22a   : > { %v1840_v60 = vadd.f32 %v2551_v50, %v3604_v53  ;;  %v2554_v61 = vadd.f32 %v2553_v59, %v2552_v56  ;;  %v2618_v63 = vadd.f32 %v2617_v62, %v2616_v58 }
 0x22c   : > { %v3619_v0 = vadd.f32 %v2615_v57, %v1840_v60  ;;  %v1843_v2 = vadd.f32 %v2554_v61, %v3604_v53 }
 0x22e   : > { %v3622_v3 = vadd.f32 %v2618_v63, %v1843_v2  ;;  %v2555_v4 = vpop.f32.mrb[76].mxu0  ;;  %v2619_v6 = vpop.f32.mrb[76].mxu1 }
 0x22f   : > { %v2556_v7 = vpop.f32.mrb[77].mxu0  ;;  %v2620_v9 = vpop.f32.mrb[77].mxu1 }
 0x230   : > { %v2557_v8 = vadd.f32 %v2556_v7, %v2555_v4  ;;  %v2558_v5 = vpop.f32.mrb[78].mxu0  ;;  %v2621_v10 = vadd.f32 %v2620_v9, %v2619_v6  ;;  %v2622_v51 = vpop.f32.mrb[78].mxu1 }
 0x231   : > { %v2559_v12 = vpop.f32.mrb[79].mxu0  ;;  %v2623_v14 = vpop.f32.mrb[79].mxu1 }
 0x232   : > { %v1848_v13 = vadd.f32 %v2557_v8, %v3604_v53  ;;  %v2560_v18 = vadd.f32 %v2559_v12, %v2558_v5  ;;  %v2624_v15 = vadd.f32 %v2623_v14, %v2622_v51 }
 0x234   : > { %v3625_v16 = vadd.f32 %v2621_v10, %v1848_v13  ;;  %v1851_v17 = vadd.f32 %v2560_v18, %v3604_v53 }
 0x236   : > { %v3628_v19 = vadd.f32 %v2624_v15, %v1851_v17  ;;  %v2561_v52 = vpop.f32.mrb[80].mxu0  ;;  %v2625_v20 = vpop.f32.mrb[80].mxu1 }
 0x237   : > { %v2562_v21 = vpop.f32.mrb[81].mxu0  ;;  %v2626_v23 = vpop.f32.mrb[81].mxu1 }
 0x238   : > { %v2563_v22 = vadd.f32 %v2562_v21, %v2561_v52  ;;  %v2564_v24 = vpop.f32.mrb[82].mxu0  ;;  %v2627_v25 = vadd.f32 %v2626_v23, %v2625_v20  ;;  %v2628_v54 = vpop.f32.mrb[82].mxu1 }
 0x239   : > { %v2565_v27 = vpop.f32.mrb[83].mxu0  ;;  %v2629_v48 = vpop.f32.mrb[83].mxu1 }
 0x23a   : > { %v1856_v29 = vadd.f32 %v2563_v22, %v3604_v53  ;;  %v2566_v30 = vadd.f32 %v2565_v27, %v2564_v24  ;;  %v2630_v31 = vadd.f32 %v2629_v48, %v2628_v54 }
 0x23c   : > { %v3631_v32 = vadd.f32 %v2627_v25, %v1856_v29  ;;  %v1859_v33 = vadd.f32 %v2566_v30, %v3604_v53 }
 0x23e   : > { %v3634_v34 = vadd.f32 %v2630_v31, %v1859_v33  ;;  %v2567_v35 = vpop.f32.mrb[84].mxu0  ;;  %v2631_v36 = vpop.f32.mrb[84].mxu1 }
 0x23f   : > { %v2568_v37 = vpop.f32.mrb[85].mxu0  ;;  %v2632_v39 = vpop.f32.mrb[85].mxu1 }
 0x240   : > { %v2569_v38 = vadd.f32 %v2568_v37, %v2567_v35  ;;  %v2570_v40 = vpop.f32.mrb[86].mxu0  ;;  %v2633_v41 = vadd.f32 %v2632_v39, %v2631_v36  ;;  %v2634_v43 = vpop.f32.mrb[86].mxu1 }
 0x241   : > { %v2571_v45 = vpop.f32.mrb[87].mxu0  ;;  %v2635_v50 = vpop.f32.mrb[87].mxu1 }
 0x242   : > { %v1864_v49 = vadd.f32 %v2569_v38, %v3604_v53  ;;  %v2572_v1 = vadd.f32 %v2571_v45, %v2570_v40  ;;  %v2636_v55 = vadd.f32 %v2635_v50, %v2634_v43 }
 0x244   : > { %v3637_v56 = vadd.f32 %v2633_v41, %v1864_v49  ;;  %v1867_v57 = vadd.f32 %v2572_v1, %v3604_v53 }
 0x246   : > { %v3640_v58 = vadd.f32 %v2636_v55, %v1867_v57  ;;  %v2573_v59 = vpop.f32.mrb[88].mxu0  ;;  %v2637_v60 = vpop.f32.mrb[88].mxu1 }
 0x247   : > { %v2574_v61 = vpop.f32.mrb[89].mxu0  ;;  %v2638_v63 = vpop.f32.mrb[89].mxu1 }
 0x248   : > { %v2575_v62 = vadd.f32 %v2574_v61, %v2573_v59  ;;  %v2576_v2 = vpop.f32.mrb[90].mxu0  ;;  %v2639_v4 = vadd.f32 %v2638_v63, %v2637_v60  ;;  %v2640_v6 = vpop.f32.mrb[90].mxu1 }
 0x249   : > { %v2577_v7 = vpop.f32.mrb[91].mxu0  ;;  %v2641_v5 = vpop.f32.mrb[91].mxu1 }
 0x24a   : > { %v1872_v8 = vadd.f32 %v2575_v62, %v3604_v53  ;;  %v2578_v9 = vadd.f32 %v2577_v7, %v2576_v2  ;;  %v2642_v10 = vadd.f32 %v2641_v5, %v2640_v6 }
 0x24c   : > { %v3643_v51 = vadd.f32 %v2639_v4, %v1872_v8  ;;  %v1875_v12 = vadd.f32 %v2578_v9, %v3604_v53 }
 0x24e   : > { %v3646_v13 = vadd.f32 %v2642_v10, %v1875_v12  ;;  %v2579_v18 = vpop.f32.mrb[92].mxu0  ;;  %v2643_v14 = vpop.f32.mrb[92].mxu1 }
 0x24f   : > { %v2580_v15 = vpop.f32.mrb[93].mxu0  ;;  %v2644_v52 = vpop.f32.mrb[93].mxu1 }
 0x250   : > { %v2581_v17 = vadd.f32 %v2580_v15, %v2579_v18  ;;  %v2582_v20 = vpop.f32.mrb[94].mxu0  ;;  %v2645_v21 = vadd.f32 %v2644_v52, %v2643_v14  ;;  %v2646_v22 = vpop.f32.mrb[94].mxu1 }
 0x251   : > { %v2583_v23 = vpop.f32.mrb[95].mxu0  ;;  %v2647_v54 = vpop.f32.mrb[95].mxu1 }
 0x252   : > { %v1880_v24 = vadd.f32 %v2581_v17, %v3604_v53  ;;  %v2584_v25 = vadd.f32 %v2583_v23, %v2582_v20  ;;  %v2648_v27 = vadd.f32 %v2647_v54, %v2646_v22 }
 0x254   : > { %v3649_v29 = vadd.f32 %v2645_v21, %v1880_v24  ;;  %v1883_v30 = vadd.f32 %v2584_v25, %v3604_v53 }
 0x256   : > { %v3652_v48 = vadd.f32 %v2648_v27, %v1883_v30  ;;  %v2665_v31 = vpop.f32.mrb[96].mxu0  ;;  %v2729_v33 = vpop.f32.mrb[96].mxu1 }
 0x257   : > { %v2666_v35 = vpop.f32.mrb[97].mxu0  ;;  %v2730_v37 = vpop.f32.mrb[97].mxu1 }
 0x258   : > { %v2667_v36 = vadd.f32 %v2666_v35, %v2665_v31  ;;  %v2668_v38 = vpop.f32.mrb[98].mxu0  ;;  %v2731_v39 = vadd.f32 %v2730_v37, %v2729_v33  ;;  %v2732_v40 = vpop.f32.mrb[98].mxu1 }
 0x259   : > { %v2669_v41 = vpop.f32.mrb[99].mxu0  ;;  %v2733_v49 = vpop.f32.mrb[99].mxu1 }
 0x25a   : > { %v2018_v43 = vadd.f32 %v2667_v36, %v3607_v26  ;;  %v2670_v45 = vadd.f32 %v2669_v41, %v2668_v38  ;;  %v2734_v1 = vadd.f32 %v2733_v49, %v2732_v40 }
 0x25c   : > { %v2115_v50 = vadd.f32 %v2731_v39, %v2018_v43  ;;  %v2021_v55 = vadd.f32 %v2670_v45, %v3610_v28 }
 0x25e   : > { %v2118_v53 = vadd.f32 %v2734_v1, %v2021_v55  ;;  %v2671_v57 = vpop.f32.mrb[100].mxu0  ;;  %v2735_v59 = vpop.f32.mrb[100].mxu1  ;;  %v2177_v61 = vmax.f32 %v2115_v50, 0.0 }
 0x25f   : > { %v2672_v60 = vpop.f32.mrb[101].mxu0  ;;  %v2736_v2 = vpop.f32.mrb[101].mxu1 }
 0x260   : > { %v2178_v62 = vmax.f32 %v2118_v53, 0.0  ;;  %v2673_v63 = vadd.f32 %v2672_v60, %v2671_v57  ;;  %v2674_v4 = vpop.f32.mrb[102].mxu0  ;;  %v2737_v6 = vadd.f32 %v2736_v2, %v2735_v59  ;;  %v2738_v7 = vpop.f32.mrb[102].mxu1 }
 0x261   : > { %v2675_v8 = vpop.f32.mrb[103].mxu0  ;;  %v2739_v10 = vpop.f32.mrb[103].mxu1 }
 0x262   : > { %v2830_v9 = vpack.c.bf16 %v2178_v62, %v2177_v61  ;;  %v2026_v26 = vadd.f32 %v2673_v63, %v3613_v42  ;;  %v2676_v5 = vadd.f32 %v2675_v8, %v2674_v4  ;;  %v2740_v12 = vadd.f32 %v2739_v10, %v2738_v7 }
 0x264   : > { %v2123_v18 = vadd.f32 %v2737_v6, %v2026_v26  ;;  %v2029_v28 = vadd.f32 %v2676_v5, %v3616_v44  ;;  %2831 = vmatpush3.bf16.xpose.msra.mxu0 %v2830_v9 }
 0x265   : > { %2832 = vmatprep.subr.bf16.mxu0 %v3133_v11 }
 0x266   : > { %v2126_v14 = vadd.f32 %v2740_v12, %v2029_v28  ;;  %v2677_v15 = vpop.f32.mrb[104].mxu0  ;;  %v2741_v17 = vpop.f32.mrb[104].mxu1  ;;  %v2179_v20 = vmax.f32 %v2123_v18, 0.0 }
 0x267   : > { %v2678_v52 = vpop.f32.mrb[105].mxu0  ;;  %v2742_v23 = vpop.f32.mrb[105].mxu1 }
 0x268   : > { %v2180_v21 = vmax.f32 %v2126_v14, 0.0  ;;  %v2679_v22 = vadd.f32 %v2678_v52, %v2677_v15  ;;  %v2680_v24 = vpop.f32.mrb[106].mxu0  ;;  %v2743_v25 = vadd.f32 %v2742_v23, %v2741_v17  ;;  %v2744_v42 = vpop.f32.mrb[106].mxu1 }
 0x269   : > { %v2681_v54 = vpop.f32.mrb[107].mxu0  ;;  %v2745_v44 = vpop.f32.mrb[107].mxu1 }
 0x26a   : > { %v2833_v27 = vpack.c.bf16 %v2180_v21, %v2179_v20  ;;  %v2034_v30 = vadd.f32 %v2679_v22, %v3619_v0  ;;  %v2682_v31 = vadd.f32 %v2681_v54, %v2680_v24  ;;  %v2746_v33 = vadd.f32 %v2745_v44, %v2744_v42 }
 0x26c   : > { %v2131_v35 = vadd.f32 %v2743_v25, %v2034_v30  ;;  %v2037_v36 = vadd.f32 %v2682_v31, %v3622_v3  ;;  %2834 = vmatpush3.bf16.xpose.msra.mxu0 %v2833_v27 }
 0x26d   : > { %2835 = vmatprep.subr.bf16.mxu0 %v3133_v11 }
 0x26e   : > { %v2134_v37 = vadd.f32 %v2746_v33, %v2037_v36  ;;  %v2683_v38 = vpop.f32.mrb[108].mxu0  ;;  %v2747_v39 = vpop.f32.mrb[108].mxu1  ;;  %v2181_v41 = vmax.f32 %v2131_v35, 0.0 }
 0x26f   : > { %v2684_v40 = vpop.f32.mrb[109].mxu0  ;;  %v2748_v49 = vpop.f32.mrb[109].mxu1 }
 0x270   : > { %v2182_v43 = vmax.f32 %v2134_v37, 0.0  ;;  %v2685_v45 = vadd.f32 %v2684_v40, %v2683_v38  ;;  %v2686_v1 = vpop.f32.mrb[110].mxu0  ;;  %v2749_v50 = vadd.f32 %v2748_v49, %v2747_v39  ;;  %v2750_v0 = vpop.f32.mrb[110].mxu1 }
 0x271   : > { %v2687_v55 = vpop.f32.mrb[111].mxu0  ;;  %v2751_v3 = vpop.f32.mrb[111].mxu1 }
 0x272   : > { %v2836_v53 = vpack.c.bf16 %v2182_v43, %v2181_v41  ;;  %v2042_v57 = vadd.f32 %v2685_v45, %v3625_v16  ;;  %v2688_v59 = vadd.f32 %v2687_v55, %v2686_v1  ;;  %v2752_v60 = vadd.f32 %v2751_v3, %v2750_v0 }
 0x274   : > { %v2139_v61 = vadd.f32 %v2749_v50, %v2042_v57  ;;  %v2045_v62 = vadd.f32 %v2688_v59, %v3628_v19  ;;  %2837 = vmatpush3.bf16.xpose.msra.mxu0 %v2836_v53 }
 0x275   : > { %2838 = vmatprep.subr.bf16.mxu0 %v3133_v11 }
 0x276   : > { %v2142_v63 = vadd.f32 %v2752_v60, %v2045_v62  ;;  %v2689_v2 = vpop.f32.mrb[112].mxu0  ;;  %v2753_v4 = vpop.f32.mrb[112].mxu1  ;;  %v2183_v7 = vmax.f32 %v2139_v61, 0.0 }
 0x277   : > { %v2690_v6 = vpop.f32.mrb[113].mxu0  ;;  %v2754_v26 = vpop.f32.mrb[113].mxu1 }
 0x278   : > { %v2184_v8 = vmax.f32 %v2142_v63, 0.0  ;;  %v2691_v9 = vadd.f32 %v2690_v6, %v2689_v2  ;;  %v2692_v5 = vpop.f32.mrb[114].mxu0  ;;  %v2755_v10 = vadd.f32 %v2754_v26, %v2753_v4  ;;  %v2756_v16 = vpop.f32.mrb[114].mxu1 }
 0x279   : > { %v2693_v12 = vpop.f32.mrb[115].mxu0  ;;  %v2757_v19 = vpop.f32.mrb[115].mxu1 }
 0x27a   : > { %v2839_v18 = vpack.c.bf16 %v2184_v8, %v2183_v7  ;;  %v2050_v28 = vadd.f32 %v2691_v9, %v3631_v32  ;;  %v2694_v14 = vadd.f32 %v2693_v12, %v2692_v5  ;;  %v2758_v15 = vadd.f32 %v2757_v19, %v2756_v16 }
 0x27c   : > { %v2147_v17 = vadd.f32 %v2755_v10, %v2050_v28  ;;  %v2053_v52 = vadd.f32 %v2694_v14, %v3634_v34  ;;  %2840 = vmatpush3.bf16.xpose.msra.mxu0 %v2839_v18 }
 0x27d   : > { %2841 = vmatprep.subr.bf16.mxu0 %v3133_v11 }
 0x27e   : > { %v2150_v20 = vadd.f32 %v2758_v15, %v2053_v52  ;;  %v2695_v21 = vpop.f32.mrb[116].mxu0  ;;  %v2759_v22 = vpop.f32.mrb[116].mxu1  ;;  %v2185_v24 = vmax.f32 %v2147_v17, 0.0 }
 0x27f   : > { %v2696_v23 = vpop.f32.mrb[117].mxu0  ;;  %v2760_v54 = vpop.f32.mrb[117].mxu1 }
 0x280   : > { %v2186_v25 = vmax.f32 %v2150_v20, 0.0  ;;  %v2697_v42 = vadd.f32 %v2696_v23, %v2695_v21  ;;  %v2698_v27 = vpop.f32.mrb[118].mxu0  ;;  %v2761_v30 = vadd.f32 %v2760_v54, %v2759_v22  ;;  %v2762_v32 = vpop.f32.mrb[118].mxu1  ;;  %v2193_v22 = vld [vmem:[%s3734_s5] sm:$0x1] }
 0x281   : > { %v2699_v31 = vpop.f32.mrb[119].mxu0  ;;  %v2763_v34 = vpop.f32.mrb[119].mxu1 }
 0x282   : > { %v2842_v44 = vpack.c.bf16 %v2186_v25, %v2185_v24  ;;  %v2058_v33 = vadd.f32 %v2697_v42, %v3637_v56  ;;  %v2700_v35 = vadd.f32 %v2699_v31, %v2698_v27  ;;  %v2764_v36 = vadd.f32 %v2763_v34, %v2762_v32 }
 0x284   : > { %v2155_v37 = vadd.f32 %v2761_v30, %v2058_v33  ;;  %v2061_v38 = vadd.f32 %v2700_v35, %v3640_v58  ;;  %2843 = vmatpush3.bf16.xpose.msra.mxu0 %v2842_v44 }
 0x285   : > { %2844 = vmatprep.subr.bf16.mxu0 %v3133_v11 }
 0x286   : > { %v2158_v39 = vadd.f32 %v2764_v36, %v2061_v38  ;;  %v2701_v40 = vpop.f32.mrb[120].mxu0  ;;  %v2765_v41 = vpop.f32.mrb[120].mxu1  ;;  %v2187_v45 = vmax.f32 %v2155_v37, 0.0 }
 0x287   : > { %v2702_v43 = vpop.f32.mrb[121].mxu0  ;;  %v2766_v50 = vpop.f32.mrb[121].mxu1 }
 0x288   : > { %v2188_v49 = vmax.f32 %v2158_v39, 0.0  ;;  %v2703_v1 = vadd.f32 %v2702_v43, %v2701_v40  ;;  %v2704_v0 = vpop.f32.mrb[122].mxu0  ;;  %v2767_v55 = vadd.f32 %v2766_v50, %v2765_v41  ;;  %v2768_v56 = vpop.f32.mrb[122].mxu1 }
 0x289   : > { %v2705_v53 = vpop.f32.mrb[123].mxu0  ;;  %v2769_v58 = vpop.f32.mrb[123].mxu1 }
 0x28a   : > { %v2845_v57 = vpack.c.bf16 %v2188_v49, %v2187_v45  ;;  %v2066_v59 = vadd.f32 %v2703_v1, %v3643_v51  ;;  %v2706_v3 = vadd.f32 %v2705_v53, %v2704_v0  ;;  %v2770_v60 = vadd.f32 %v2769_v58, %v2768_v56 }
 0x28c   : > { %v2163_v61 = vadd.f32 %v2767_v55, %v2066_v59  ;;  %v2069_v62 = vadd.f32 %v2706_v3, %v3646_v13  ;;  %2846 = vmatpush3.bf16.xpose.msra.mxu0 %v2845_v57 }
 0x28d   : > { %2847 = vmatprep.subr.bf16.mxu0 %v3133_v11 }
 0x28e   : > { %v2166_v63 = vadd.f32 %v2770_v60, %v2069_v62  ;;  %v2707_v2 = vpop.f32.mrb[124].mxu0  ;;  %v2771_v4 = vpop.f32.mrb[124].mxu1  ;;  %v2189_v7 = vmax.f32 %v2163_v61, 0.0 }
 0x28f   : > { %v2708_v6 = vpop.f32.mrb[125].mxu0  ;;  %v2772_v26 = vpop.f32.mrb[125].mxu1 }
 0x290   : > { %v2190_v8 = vmax.f32 %v2166_v63, 0.0  ;;  %v2709_v9 = vadd.f32 %v2708_v6, %v2707_v2  ;;  %v2710_v5 = vpop.f32.mrb[126].mxu0  ;;  %v2773_v10 = vadd.f32 %v2772_v26, %v2771_v4  ;;  %v2774_v51 = vpop.f32.mrb[126].mxu1 }
 0x291   : > { %v2711_v16 = vpop.f32.mrb[127].mxu0  ;;  %v2775_v13 = vpop.f32.mrb[127].mxu1 }
 0x292   : > { %v2848_v12 = vpack.c.bf16 %v2190_v8, %v2189_v7  ;;  %v2074_v18 = vadd.f32 %v2709_v9, %v3649_v29  ;;  %v2712_v28 = vadd.f32 %v2711_v16, %v2710_v5  ;;  %v2776_v14 = vadd.f32 %v2775_v13, %v2774_v51  ;;  %v2198_v29 = vpop.permute.xlu0 %2197 }
 0x293   : > { %v2203_v23 = vrot.slane %v2198_v29, %v363_v47 }
 0x294   : > { %v2171_v19 = vadd.f32 %v2773_v10, %v2074_v18  ;;  %v2077_v15 = vadd.f32 %v2712_v28, %v3652_v48  ;;  %2849 = vmatpush3.bf16.xpose.msra.mxu0 %v2848_v12 }
 0x295   : > { %2850 = vmatprep.subr.bf16.mxu0 %v3133_v11 }
 0x296   : > { %v2174_v17 = vadd.f32 %v2776_v14, %v2077_v15  ;;  %v2191_v52 = vmax.f32 %v2171_v19, 0.0 }
 0x298   : > { %v2192_v20 = vmax.f32 %v2174_v17, 0.0 }
 0x29a   : > { %v2851_v21 = vpack.c.bf16 %v2192_v20, %v2191_v52 }
 0x29c   : > { %2852 = vmatpush3.bf16.xpose.msra.mxu0 %v2851_v21 }
 0x2a3   : > { %2827 = vmatmul.mubr.f32.vlgmr.msra.gmra.mrb[128].mxu0 %v2193_v22 }
 0x376   : > { %v2270_v48 = vpop.f32.mrb[128].mxu0 }
 0x377   : > { %v2271_v24 = vadd.f32 %v2270_v48, %v2203_v23  ;;  %v2828_v25 = vpop.f32.mrb[129].mxu0 }
 0x379   : > { %v2274_v11 = vsub.f32 0.0, %v2271_v24 }
 0x37b   : > { %v2275_v42 = vmul.f32 1.442695, %v2274_v11 }
 0x37d   : > { %2994 = vpow2.f32 %v2275_v42 }
 0x387   : > { %v2995_v54 = vpop.eup %2994 }
 0x388   : > { %v2277_v27 = vadd.f32 1.0, %v2995_v54 }
 0x38a   : > { %2996 = vrcp.f32 %v2277_v27 }
 0x394   : > { %v2997_v46 = vpop.eup %2996 }
 0x395   : > { %2280 = vst [vmem:[%s303_s15] sm:$0x1] %v2997_v46 }
 0x396   : > { %3067 = shalt.err (!%p3064_p11)
}
 0x397   : > { %s3068_s17 = scalar_lea.hbm %s3687_s6, 16  ;;  %s3072_s9 = scalar_lea.hbm %s3736_s7, 32 }
 0x398   : > { %p3069_p13 = scmp.ne.s32.totalorder %s3687_s6, %s3068_s17  ;;  %p3073_p6 = scmp.lt.u32.totalorder %s3687_s6, %s3736_s7 }
 0x399   : > { %p3074_p9 = scmp.lt.u32.totalorder %s3072_s9, %s3068_s17  ;;  %p3076_p10 = scmp.lt.u32.totalorder %s3068_s17, %s3687_s6 }
 0x39a   : > { %p3070_p0 = pnand %p3069_p13, %p3749_p1 }
 0x39b   : > { %p3075_p12 = por %p3074_p9, %p3073_p6 }
 0x39c   : > { %p3071_p5 = pneg %p3070_p0 }
 0x39d   : > { %p3077_p2 = por %p3076_p10, %p3075_p12 }
 0x39f   : > { %p3078_p3 = pnand %p3077_p2, %p3071_p5 }
 0x3a1   : > { %3081 = shalt.err (!%p3078_p3)
}
 0x3a2   : > { %2861 = dma.vmem_to_hbm [thread:$0]  (%p3749_p1), %s3689_s18, 16, %s3687_s6, %s2282_s19  }
 0x3a3 PF: > { %p2878_p4 = scmp.ge.s32.totalorder %s3124_s29, 2  ;;  %s2306_s15 = sand.u32 1, %s3112_s26  }
 0x3a4   : > { %p3750_p7 = scmp.ne.s32.totalorder %s3741_s13, 0  ;;  %s2307_s20 = scalar_lea.sflag [#allocation5], %s2306_s15 }
 0x3a6   : > { %p2871_p8 = pnand %p2878_p4, %p3750_p7 }
 0x3a8   : > { %3107 = dma.done.wait (!%p2871_p8), %s2307_s20, 16  }
 0x3a9   : > { %3109 = vsyncadd (!%p2871_p8), %s2307_s20, 4294967280  ;;  %p21_p11 = scmp.ge.s32.totalorder %s3205_s8, 4   ;;  %s3751_s26 = smov %s3116_s27 }
 0x3aa   : > { %s3752_s27 = smov %s3120_s28  ;;  %s3753_s28 = smov %s3216_s11 }
 0x3ab   : > { %s3754_s29 = smov %s3205_s8  ;;  %23 = sbr.rel (!%p21_p11) target bundleno = 8 (0x8), region = 92 }
 0x3b2   :  { %2311 = vsyncpa [#allocation4], 1 }
 0x3b3   :  { %2313 = vsyncpa [#allocation4 + $0x1], 1 }
 0x3b4   :  { %2314 = vsyncpa [#allocation7], 1 }
 0x3b5   :  { %2315 = vsyncpa [#allocation5], 1 }
 0x3b6   :  { %2317 = vsyncpa [#allocation5 + $0x1], 1 }

</bundles_post_ra>
